<compile_context>
chip_gen: v6e
topology: v6e:2x2x1
jax: 0.10.0
libtpu: 0.0.40
codegen_flags: <defaults>
</compile_context>

<pallas_src>
import functools
import math

import numpy as np
import jax
import jax.numpy as jnp
from jax import lax
from jax.experimental import pallas as pl
from jax.experimental.pallas import tpu as pltpu

# ----------------------------- model config ---------------------------------
H = 32          # hidden size
S = 16          # sequence length
NH = 4          # attention heads
HD = H // NH    # head dim
F = 64          # FFN intermediate size
VOCAB = 100     # vocab size (after resize_token_embeddings)
EPS = 1e-5
OUT_LANES = 128  # lane-dense output slab width

# weight-slab layout: 128-aligned column groups in a (64, 512) slab
WSLAB_ROWS = 64
WSLAB_COLS = 512
_QKV_OFF, _WO_OFF, _FF1_OFF, _FF2_OFF = 0, 128, 256, 384


# ------------------------------ packing --------------------------------------
def pack_params(params):
    """Pack the 11 parameter tensors into one weight slab + one bias/LN slab."""
    wa = jnp.zeros((WSLAB_ROWS, WSLAB_COLS), jnp.float32)
    wa = wa.at[0:H, _QKV_OFF:_QKV_OFF + 3 * H].set(params["w_qkv"])
    wa = wa.at[0:H, _WO_OFF:_WO_OFF + H].set(params["w_o"])
    wa = wa.at[0:H, _FF1_OFF:_FF1_OFF + F].set(params["w_ff1"])
    wa = wa.at[0:F, _FF2_OFF:_FF2_OFF + H].set(params["w_ff2"])   # natural (F, H)

    wb = jnp.zeros((8, 128), jnp.float32)
    wb = wb.at[0, 0:3 * H].set(params["b_qkv"][0])
    wb = wb.at[0, 96:96 + H].set(params["b_o"][0])
    wb = wb.at[1, 0:F].set(params["b_ff1"][0])
    wb = wb.at[1, 64:64 + H].set(params["b_ff2"][0])
    wb = wb.at[2:4, 0:H].set(params["ln_emb"])
    wb = wb.at[4:6, 0:H].set(params["ln1"])
    wb = wb.at[6:8, 0:H].set(params["ln2"])
    return wa, wb


# ------------------------------ fused kernel ---------------------------------
def _layernorm(v, g, b):
    mu = jnp.mean(v, axis=-1, keepdims=True)
    var = jnp.mean(jnp.square(v - mu), axis=-1, keepdims=True)
    return (v - mu) * lax.rsqrt(var + EPS) * g + b


def fused_kernel(seq_ref, start_ref, end_ref,            # scalar prefetch (SMEM)
                 x_ref, bias_ref, sel_ref, wa_ref, wb_ref,  # VMEM inputs
                 out_ref,                                  # VMEM output (one slab)
                 s_scr,                                    # VMEM scratch: scores
                 *, batch, n_ev, aggr):
    B = batch
    M = B * S

    # ---- unpack parameter slabs (static slices of loaded values) ----
    wa = wa_ref[...]                                      # (64, 512)
    wb = wb_ref[...]                                      # (8, 128)
    w_qkv = wa[0:H, _QKV_OFF:_QKV_OFF + 3 * H]
    w_o = wa[0:H, _WO_OFF:_WO_OFF + H]
    w_ff1 = wa[0:H, _FF1_OFF:_FF1_OFF + F]
    w_ff2 = wa[0:F, _FF2_OFF:_FF2_OFF + H]                # (F, H), untransposed
    b_qkv = wb[0:1, 0:3 * H]
    b_o = wb[0:1, 96:96 + H]
    b_ff1 = wb[1:2, 0:F]
    b_ff2 = wb[1:2, 64:64 + H]
    g_e, be_e = wb[2:3, 0:H], wb[3:4, 0:H]
    g_1, be_1 = wb[4:5, 0:H], wb[5:6, 0:H]
    g_2, be_2 = wb[6:7, 0:H], wb[7:8, 0:H]

    x = x_ref[...]                                        # (M, H) flattened rows
    bias = bias_ref[...]                                  # (M, M) blk-diag + pad bias

    # embedding LayerNorm
    x0 = _layernorm(x, g_e, be_e)

    # fused QKV projection on the flattened batch (single MXU pass, K=H)
    qkv = jnp.dot(x0, w_qkv, preferred_element_type=jnp.float32) + b_qkv
    q = qkv[:, 0:H] * (1.0 / math.sqrt(HD))               # fold scale once
    k = qkv[:, H:2 * H]
    v = qkv[:, 2 * H:3 * H]

    # per-head scores over the whole flattened batch, written into VMEM scratch
    for h in range(NH):                                   # NH = 4 matmuls
        cols = slice(h * HD, (h + 1) * HD)
        s = lax.dot_general(q[:, cols], k[:, cols],
                            (((1,), (1,)), ((), ())),
                            preferred_element_type=jnp.float32)   # (M, M)
        s_scr[h * M:(h + 1) * M, :] = s + bias

    # one softmax pass over all heads (exact division — no approx reciprocal)
    s_all = s_scr[...]                                    # (NH*M, M)
    s_all = s_all - jnp.max(s_all, axis=-1, keepdims=True)
    p_all = jnp.exp(s_all)
    p_all = p_all / jnp.sum(p_all, axis=-1, keepdims=True)

    # per-head contexts, lane-concatenated -> ONE output projection matmul
    heads = [jnp.dot(p_all[h * M:(h + 1) * M, :], v[:, h * HD:(h + 1) * HD],
                     preferred_element_type=jnp.float32)
             for h in range(NH)]
    ctx = jnp.concatenate(heads, axis=1)                  # (M, H)
    attn = jnp.dot(ctx, w_o, preferred_element_type=jnp.float32) + b_o

    h1 = _layernorm(x0 + attn, g_1, be_1)

    # FFN on the flattened batch (w_ff2 in natural (K, N) layout)
    ff = jax.nn.gelu(jnp.dot(h1, w_ff1, preferred_element_type=jnp.float32)
                     + b_ff1, approximate=True)
    ff = jnp.dot(ff, w_ff2, preferred_element_type=jnp.float32) + b_ff2
    y = _layernorm(h1 + ff, g_2, be_2)                    # (M, H)

    # ---- epilogue: CLS rows + span embeddings, one lane-dense output slab ----
    R = out_ref.shape[0]
    sel = sel_ref[...]                                    # (R, M)
    if aggr == "mean":
        # one selection matmul covers CLS one-hots AND span means
        vals = jnp.dot(sel, y, preferred_element_type=jnp.float32)   # (R, H)
    elif aggr == "max":
        cls_rows = jnp.dot(sel, y, preferred_element_type=jnp.float32)[0:B]
        ridx = lax.broadcasted_iota(jnp.int32, (M, 1), 0)
        parts = [cls_rows]
        for e in range(n_ev):                             # n_ev small, static
            lo = seq_ref[e] * S + start_ref[e]
            hi = seq_ref[e] * S + end_ref[e]
            inside = (ridx >= lo) & (ridx < hi)
            parts.append(jnp.max(jnp.where(inside, y, jnp.float32(-1e30)),
                                 axis=0, keepdims=True))
        pad = R - B - n_ev
        if pad > 0:
            parts.append(jnp.zeros((pad, H), jnp.float32))
        vals = jnp.concatenate(parts, axis=0)             # (R, H)
    else:
        raise NotImplementedError(aggr)

    # lane-pad to 128 and do ONE unmasked full-width store
    out_ref[...] = jnp.concatenate(
        [vals, jnp.zeros((R, OUT_LANES - H), jnp.float32)], axis=1)


def fused_forward(x_flat, bias, sel, wa, wb, seq_ids, starts, ends,
                  *, aggr, batch, n_ev):
    """Returns one (rows_pad, 128) slab: rows 0:B CLS, rows B:B+n_ev events."""
    M = x_flat.shape[0]
    r_pad = sel.shape[0]
    kernel = functools.partial(fused_kernel, batch=batch, n_ev=n_ev, aggr=aggr)
    return pl.pallas_call(
        kernel,
        out_shape=jax.ShapeDtypeStruct((r_pad, OUT_LANES), jnp.float32),
        grid_spec=pltpu.PrefetchScalarGridSpec(
            num_scalar_prefetch=3,
            grid=(1,),
            in_specs=[pl.BlockSpec((M, H), lambda i, *_: (0, 0)),
                      pl.BlockSpec((M, M), lambda i, *_: (0, 0)),
                      pl.BlockSpec((r_pad, M), lambda i, *_: (0, 0)),
                      pl.BlockSpec((WSLAB_ROWS, WSLAB_COLS), lambda i, *_: (0, 0)),
                      pl.BlockSpec((8, 128), lambda i, *_: (0, 0))],
            out_specs=pl.BlockSpec((r_pad, OUT_LANES), lambda i, *_: (0, 0)),
            scratch_shapes=[pltpu.VMEM((NH * M, M), jnp.float32)]),
        compiler_params=pltpu.CompilerParams(
            dimension_semantics=("arbitrary",)),
    )(seq_ids, starts, ends, x_flat, bias, sel, wa, wb)


# ------------------------------ parameters -----------------------------------
def init_params(key):
    ks = jax.random.split(key, 6)
    norm = lambda k, shape: (0.02 * jax.random.normal(k, shape)).astype(jnp.float32)
    ln = jnp.stack([jnp.ones(H), jnp.zeros(H)]).astype(jnp.float32)
    return {
        "word_emb": norm(ks[0], (VOCAB, H)),
        "pos_emb": norm(ks[1], (S, H)),
        "w_qkv": norm(ks[2], (H, 3 * H)),
        "b_qkv": jnp.zeros((1, 3 * H), jnp.float32),
        "w_o": norm(ks[3], (H, H)),
        "b_o": jnp.zeros((1, H), jnp.float32),
        "w_ff1": norm(ks[4], (H, F)),
        "b_ff1": jnp.zeros((1, F), jnp.float32),
        "w_ff2": norm(ks[5], (F, H)),
        "b_ff2": jnp.zeros((1, H), jnp.float32),
        "ln_emb": ln, "ln1": ln, "ln2": ln,
    }


# --------------------------- DocEventEncoder.forward -------------------------
def _flatten_spans(event_spans, doc_splits):
    seq_ids, starts, ends = [], [], []
    for d in range(len(doc_splits) - 1):
        for j, spans in enumerate(event_spans[d]):
            for span in spans:
                seq_ids.append(doc_splits[d] + j)
                starts.append(span[0])
                ends.append(span[1])
    return seq_ids, starts, ends


def doc_event_encoder_forward(params, inputs, aggr="mean"):
    input_ids = inputs["input_ids"]            # (B, S) int32
    attention_mask = inputs["attention_mask"]  # (B, S)
    event_spans = inputs["event_spans"]        # per-doc -> per-seq -> [start, end)
    doc_splits = inputs["splits"]              # len n_docs + 1
    B = input_ids.shape[0]
    M = B * S

    # embedding lookup (glue, stays in XLA)
    x = jnp.take(params["word_emb"], input_ids, axis=0) + params["pos_emb"][None]
    x_flat = x.reshape(M, H)
    wa, wb = pack_params(params)

    # host-side precompute: block-diagonal + key-padding additive bias (M, M)
    mask_np = np.asarray(attention_mask).reshape(M) > 0
    row_seq = np.arange(M) // S
    same = row_seq[:, None] == row_seq[None, :]
    bias = jnp.asarray(np.where(same & mask_np[None, :], 0.0, -1e9)
                       .astype(np.float32))

    # host-side precompute: selection matrix (CLS one-hots + span-mean weights)
    seq_ids, starts, ends = _flatten_spans(event_spans, doc_splits)
    n_ev = len(seq_ids)
    n_rows = B + n_ev
    r_pad = max(8, ((n_rows + 7) // 8) * 8)               # sublane-dense output slab
    sel_np = np.zeros((r_pad, M), np.float32)
    for b in range(B):
        sel_np[b, b * S] = 1.0                            # CLS rows
    if aggr == "mean":
        for e, (sq, st, en) in enumerate(zip(seq_ids, starts, ends)):
            lo, hi = sq * S + st, sq * S + en
            cnt = max(hi - lo, 1)
            sel_np[B + e, lo:hi] = 1.0 / cnt              # exact 1/count
    sel = jnp.asarray(sel_np)

    seq_a = jnp.asarray(seq_ids or [0], jnp.int32)
    st_a = jnp.asarray(starts or [0], jnp.int32)
    en_a = jnp.asarray(ends or [1], jnp.int32)

    out = fused_forward(x_flat, bias, sel, wa, wb, seq_a, st_a, en_a,
                        aggr=aggr, batch=B, n_ev=n_ev)
    cls = out[0:B, 0:H]
    event_flat = out[B:B + n_ev, 0:H]

    doc_embeds, event_embeds = [], []
    off = 0
    for d in range(len(doc_splits) - 1):
        doc_embeds.append(cls[doc_splits[d]:doc_splits[d + 1]])
        cnt = sum(len(sp) for sp in event_spans[d])
        event_embeds.append(event_flat[off:off + cnt])
        off += cnt
    return doc_embeds, event_embeds


# ---------------------------- pure-JAX reference ------------------------------
def reference_hidden(params, x_embed, attention_mask):
    B = x_embed.shape[0]
    m = attention_mask.astype(jnp.float32)

    def ln(v, gb):
        mu = jnp.mean(v, axis=-1, keepdims=True)
        var = jnp.mean(jnp.square(v - mu), axis=-1, keepdims=True)
        return (v - mu) / jnp.sqrt(var + EPS) * gb[0] + gb[1]

    x0 = ln(x_embed, params["ln_emb"])
    qkv = x0 @ params["w_qkv"] + params["b_qkv"]
    q, k, v = jnp.split(qkv, 3, axis=-1)
    split_heads = lambda t: t.reshape(B, S, NH, HD).transpose(0, 2, 1, 3)
    qh, kh, vh = split_heads(q), split_heads(k), split_heads(v)
    s = jnp.einsum("bhqd,bhkd->bhqk", qh, kh) / math.sqrt(HD)
    s = s + (m[:, None, None, :] - 1.0) * 1e9
    p = jax.nn.softmax(s, axis=-1)
    ctx = jnp.einsum("bhqk,bhkd->bhqd", p, vh).transpose(0, 2, 1, 3).reshape(B, S, H)
    attn = ctx @ params["w_o"] + params["b_o"]
    h1 = ln(x0 + attn, params["ln1"])
    ff = jax.nn.gelu(h1 @ params["w_ff1"] + params["b_ff1"], approximate=True)
    ff = ff @ params["w_ff2"] + params["b_ff2"]
    return ln(h1 + ff, params["ln2"])


# ----------------------------------- main ------------------------------------
if __name__ == "__main__":
    key = jax.random.PRNGKey(0)
    pkey, ikey = jax.random.split(key)
    params = init_params(pkey)

    B = 3  # 3 sequences split across 2 documents
    input_ids = jax.random.randint(ikey, (B, S), 0, VOCAB, dtype=jnp.int32)
    attention_mask = jnp.ones((B, S), jnp.int32).at[:, 13:].set(0)   # pad last 3
    event_spans = [
        [[[2, 5], [7, 9]],        # doc 0, seq 0
         [[1, 3]]],               # doc 0, seq 1
        [[[4, 8], [10, 12]]],     # doc 1, seq 2
    ]
    splits = [0, 2, 3]
    inputs = {"input_ids": input_ids, "attention_mask": attention_mask,
              "event_spans": event_spans, "splits": splits}

    doc_embeds, event_embeds = doc_event_encoder_forward(params, inputs, aggr="mean")
    doc_embeds = [jax.block_until_ready(d) for d in doc_embeds]
    event_embeds = [jax.block_until_ready(e) for e in event_embeds]

    # sanity: pure-JAX reference of the same synthetic encoder
    x = jnp.take(params["word_emb"], input_ids, axis=0) + params["pos_emb"][None]
    hid_ref = reference_hidden(params, x, attention_mask)

    assert doc_embeds[0].shape == (2, H) and doc_embeds[1].shape == (1, H)
    assert event_embeds[0].shape == (3, H) and event_embeds[1].shape == (2, H)
    tol = dict(atol=5e-3, rtol=5e-3)   # exact softmax/mean now; residual is matmul precision
    assert jnp.allclose(doc_embeds[0][0], hid_ref[0, 0], **tol)
    assert jnp.allclose(doc_embeds[0][1], hid_ref[1, 0], **tol)
    assert jnp.allclose(doc_embeds[1][0], hid_ref[2, 0], **tol)
    assert jnp.allclose(event_embeds[0][0], jnp.mean(hid_ref[0, 2:5], axis=0), **tol)
    assert jnp.allclose(event_embeds[0][1], jnp.mean(hid_ref[0, 7:9], axis=0), **tol)
    assert jnp.allclose(event_embeds[0][2], jnp.mean(hid_ref[1, 1:3], axis=0), **tol)
    assert jnp.allclose(event_embeds[1][0], jnp.mean(hid_ref[2, 4:8], axis=0), **tol)
    assert jnp.allclose(event_embeds[1][1], jnp.mean(hid_ref[2, 10:12], axis=0), **tol)

    # also exercise the 'max' aggregation path once
    _, event_max = doc_event_encoder_forward(params, inputs, aggr="max")
    event_max = [jax.block_until_ready(e) for e in event_max]
    assert jnp.allclose(event_max[1][0], jnp.max(hid_ref[2, 4:8], axis=0), **tol)
    assert jnp.allclose(event_max[0][0], jnp.max(hid_ref[0, 2:5], axis=0), **tol)

    print("KERNEL_OK")
</pallas_src>

<mosaic_0001>
module attributes {stable_mosaic.version = 11 : i64} {
  func.func @fused_kernel(%arg0: i32, %arg1: memref<5xi32, #tpu.memory_space<smem>>, %arg2: memref<5xi32, #tpu.memory_space<smem>>, %arg3: memref<5xi32, #tpu.memory_space<smem>>, %arg4: memref<48x32xf32, #tpu.memory_space<vmem>>, %arg5: memref<48x48xf32, #tpu.memory_space<vmem>>, %arg6: memref<8x48xf32, #tpu.memory_space<vmem>>, %arg7: memref<64x512xf32, #tpu.memory_space<vmem>>, %arg8: memref<8x128xf32, #tpu.memory_space<vmem>>, %arg9: memref<8x128xf32, #tpu.memory_space<vmem>>, %arg10: memref<192x48xf32, #tpu.memory_space<vmem>>) attributes {dimension_semantics = [#tpu.dimension_semantics<arbitrary>], iteration_bounds = array<i64: 1>, scalar_prefetch = 3 : i64, scratch_operands = 1 : i64, tpu.core_type = #tpu.core_type<tc>, window_params = [{pipeline_mode = #tpu.pipeline_mode<synchronous>, transform_indices = @transform_0, window_bounds = array<i64: 48, 32>}, {pipeline_mode = #tpu.pipeline_mode<synchronous>, transform_indices = @transform_1, window_bounds = array<i64: 48, 48>}, {pipeline_mode = #tpu.pipeline_mode<synchronous>, transform_indices = @transform_2, window_bounds = array<i64: 8, 48>}, {pipeline_mode = #tpu.pipeline_mode<synchronous>, transform_indices = @transform_3, window_bounds = array<i64: 64, 512>}, {pipeline_mode = #tpu.pipeline_mode<synchronous>, transform_indices = @transform_4, window_bounds = array<i64: 8, 128>}, {pipeline_mode = #tpu.pipeline_mode<synchronous>, transform_indices = @transform_5, window_bounds = array<i64: 8, 128>}]} {
    %c0 = arith.constant 0 : index
    %c0_0 = arith.constant 0 : index
    %0 = vector.load %arg7[%c0, %c0_0] : memref<64x512xf32, #tpu.memory_space<vmem>>, vector<64x512xf32>
    %c0_1 = arith.constant 0 : index
    %c0_2 = arith.constant 0 : index
    %1 = vector.load %arg8[%c0_1, %c0_2] : memref<8x128xf32, #tpu.memory_space<vmem>>, vector<8x128xf32>
    %2 = vector.extract_strided_slice %0 {offsets = [0, 0], sizes = [32, 96], strides = [1, 1]} : vector<64x512xf32> to vector<32x96xf32>
    %3 = vector.extract_strided_slice %0 {offsets = [0, 128], sizes = [32, 32], strides = [1, 1]} : vector<64x512xf32> to vector<32x32xf32>
    %4 = vector.extract_strided_slice %0 {offsets = [0, 256], sizes = [32, 64], strides = [1, 1]} : vector<64x512xf32> to vector<32x64xf32>
    %5 = vector.extract_strided_slice %0 {offsets = [0, 384], sizes = [64, 32], strides = [1, 1]} : vector<64x512xf32> to vector<64x32xf32>
    %6 = vector.extract_strided_slice %1 {offsets = [0, 0], sizes = [1, 96], strides = [1, 1]} : vector<8x128xf32> to vector<1x96xf32>
    %7 = vector.extract_strided_slice %1 {offsets = [0, 96], sizes = [1, 32], strides = [1, 1]} : vector<8x128xf32> to vector<1x32xf32>
    %8 = vector.extract_strided_slice %1 {offsets = [1, 0], sizes = [1, 64], strides = [1, 1]} : vector<8x128xf32> to vector<1x64xf32>
    %9 = vector.extract_strided_slice %1 {offsets = [1, 64], sizes = [1, 32], strides = [1, 1]} : vector<8x128xf32> to vector<1x32xf32>
    %10 = vector.extract_strided_slice %1 {offsets = [2, 0], sizes = [1, 32], strides = [1, 1]} : vector<8x128xf32> to vector<1x32xf32>
    %11 = vector.extract_strided_slice %1 {offsets = [3, 0], sizes = [1, 32], strides = [1, 1]} : vector<8x128xf32> to vector<1x32xf32>
    %12 = vector.extract_strided_slice %1 {offsets = [4, 0], sizes = [1, 32], strides = [1, 1]} : vector<8x128xf32> to vector<1x32xf32>
    %13 = vector.extract_strided_slice %1 {offsets = [5, 0], sizes = [1, 32], strides = [1, 1]} : vector<8x128xf32> to vector<1x32xf32>
    %14 = vector.extract_strided_slice %1 {offsets = [6, 0], sizes = [1, 32], strides = [1, 1]} : vector<8x128xf32> to vector<1x32xf32>
    %15 = vector.extract_strided_slice %1 {offsets = [7, 0], sizes = [1, 32], strides = [1, 1]} : vector<8x128xf32> to vector<1x32xf32>
    %c0_3 = arith.constant 0 : index
    %c0_4 = arith.constant 0 : index
    %16 = vector.load %arg4[%c0_3, %c0_4] : memref<48x32xf32, #tpu.memory_space<vmem>>, vector<48x32xf32>
    %c0_5 = arith.constant 0 : index
    %c0_6 = arith.constant 0 : index
    %17 = vector.load %arg5[%c0_5, %c0_6] : memref<48x48xf32, #tpu.memory_space<vmem>>, vector<48x48xf32>
    %cst = arith.constant dense<0.000000e+00> : vector<48xf32>
    %18 = vector.multi_reduction <add>, %16, %cst [1] : vector<48x32xf32> to vector<48xf32>
    %19 = vector.shape_cast %18 : vector<48xf32> to vector<48x1xf32>
    %cst_7 = arith.constant 3.200000e+01 : f32
    %20 = vector.broadcast %cst_7 : f32 to vector<48x1xf32>
    %21 = arith.divf %19, %20 : vector<48x1xf32>
    %22 = vector.broadcast %21 : vector<48x1xf32> to vector<48x32xf32>
    %23 = arith.subf %16, %22 : vector<48x32xf32>
    %24 = arith.mulf %23, %23 : vector<48x32xf32>
    %cst_8 = arith.constant dense<0.000000e+00> : vector<48xf32>
    %25 = vector.multi_reduction <add>, %24, %cst_8 [1] : vector<48x32xf32> to vector<48xf32>
    %26 = vector.shape_cast %25 : vector<48xf32> to vector<48x1xf32>
    %cst_9 = arith.constant 3.200000e+01 : f32
    %27 = vector.broadcast %cst_9 : f32 to vector<48x1xf32>
    %28 = arith.divf %26, %27 : vector<48x1xf32>
    %29 = vector.broadcast %21 : vector<48x1xf32> to vector<48x32xf32>
    %30 = arith.subf %16, %29 : vector<48x32xf32>
    %cst_10 = arith.constant 9.99999974E-6 : f32
    %31 = vector.broadcast %cst_10 : f32 to vector<48x1xf32>
    %32 = arith.addf %28, %31 : vector<48x1xf32>
    %33 = math.rsqrt %32 : vector<48x1xf32>
    %34 = vector.broadcast %33 : vector<48x1xf32> to vector<48x32xf32>
    %35 = arith.mulf %30, %34 : vector<48x32xf32>
    %36 = vector.broadcast %10 : vector<1x32xf32> to vector<48x32xf32>
    %37 = arith.mulf %35, %36 : vector<48x32xf32>
    %38 = vector.broadcast %11 : vector<1x32xf32> to vector<48x32xf32>
    %39 = arith.addf %37, %38 : vector<48x32xf32>
    %cst_11 = arith.constant dense<0.000000e+00> : vector<48x96xf32>
    %40 = tpu.matmul %39, %2, %cst_11 {dimension_numbers = #tpu.dot_dimension_numbers<[1], [0], [0], [1], [0, 0, 1, 1], [], []>} : vector<48x32xf32>, vector<32x96xf32>, vector<48x96xf32> -> vector<48x96xf32>
    %41 = vector.broadcast %6 : vector<1x96xf32> to vector<48x96xf32>
    %42 = arith.addf %40, %41 : vector<48x96xf32>
    %43 = vector.extract_strided_slice %42 {offsets = [0, 0], sizes = [48, 32], strides = [1, 1]} : vector<48x96xf32> to vector<48x32xf32>
    %cst_12 = arith.constant 0.353553385 : f32
    %44 = vector.broadcast %cst_12 : f32 to vector<48x32xf32>
    %45 = arith.mulf %43, %44 : vector<48x32xf32>
    %46 = vector.extract_strided_slice %42 {offsets = [0, 32], sizes = [48, 32], strides = [1, 1]} : vector<48x96xf32> to vector<48x32xf32>
    %47 = vector.extract_strided_slice %42 {offsets = [0, 64], sizes = [48, 32], strides = [1, 1]} : vector<48x96xf32> to vector<48x32xf32>
    %48 = vector.extract_strided_slice %45 {offsets = [0, 0], sizes = [48, 8], strides = [1, 1]} : vector<48x32xf32> to vector<48x8xf32>
    %49 = vector.extract_strided_slice %46 {offsets = [0, 0], sizes = [48, 8], strides = [1, 1]} : vector<48x32xf32> to vector<48x8xf32>
    %cst_13 = arith.constant dense<0.000000e+00> : vector<48x48xf32>
    %50 = tpu.matmul %48, %49, %cst_13 {dimension_numbers = #tpu.dot_dimension_numbers<[1], [1], [0], [0], [0, 0, 1, 0], [], []>} : vector<48x8xf32>, vector<48x8xf32>, vector<48x48xf32> -> vector<48x48xf32>
    %51 = arith.addf %50, %17 : vector<48x48xf32>
    %c0_14 = arith.constant 0 : index
    %c0_15 = arith.constant 0 : index
    %52 = vector.load %arg10[%c0_14, %c0_15] : memref<192x48xf32, #tpu.memory_space<vmem>>, vector<48x48xf32>
    tpu.vector_store %arg10[%c0_14, %c0_15], %51 {strides = array<i32>} : memref<192x48xf32, #tpu.memory_space<vmem>>, vector<48x48xf32>,
    %53 = vector.extract_strided_slice %45 {offsets = [0, 8], sizes = [48, 8], strides = [1, 1]} : vector<48x32xf32> to vector<48x8xf32>
    %54 = vector.extract_strided_slice %46 {offsets = [0, 8], sizes = [48, 8], strides = [1, 1]} : vector<48x32xf32> to vector<48x8xf32>
    %cst_16 = arith.constant dense<0.000000e+00> : vector<48x48xf32>
    %55 = tpu.matmul %53, %54, %cst_16 {dimension_numbers = #tpu.dot_dimension_numbers<[1], [1], [0], [0], [0, 0, 1, 0], [], []>} : vector<48x8xf32>, vector<48x8xf32>, vector<48x48xf32> -> vector<48x48xf32>
    %56 = arith.addf %55, %17 : vector<48x48xf32>
    %c48 = arith.constant 48 : index
    %c0_17 = arith.constant 0 : index
    %57 = vector.load %arg10[%c48, %c0_17] : memref<192x48xf32, #tpu.memory_space<vmem>>, vector<48x48xf32>
    tpu.vector_store %arg10[%c48, %c0_17], %56 {strides = array<i32>} : memref<192x48xf32, #tpu.memory_space<vmem>>, vector<48x48xf32>,
    %58 = vector.extract_strided_slice %45 {offsets = [0, 16], sizes = [48, 8], strides = [1, 1]} : vector<48x32xf32> to vector<48x8xf32>
    %59 = vector.extract_strided_slice %46 {offsets = [0, 16], sizes = [48, 8], strides = [1, 1]} : vector<48x32xf32> to vector<48x8xf32>
    %cst_18 = arith.constant dense<0.000000e+00> : vector<48x48xf32>
    %60 = tpu.matmul %58, %59, %cst_18 {dimension_numbers = #tpu.dot_dimension_numbers<[1], [1], [0], [0], [0, 0, 1, 0], [], []>} : vector<48x8xf32>, vector<48x8xf32>, vector<48x48xf32> -> vector<48x48xf32>
    %61 = arith.addf %60, %17 : vector<48x48xf32>
    %c96 = arith.constant 96 : index
    %c0_19 = arith.constant 0 : index
    %62 = vector.load %arg10[%c96, %c0_19] : memref<192x48xf32, #tpu.memory_space<vmem>>, vector<48x48xf32>
    tpu.vector_store %arg10[%c96, %c0_19], %61 {strides = array<i32>} : memref<192x48xf32, #tpu.memory_space<vmem>>, vector<48x48xf32>,
    %63 = vector.extract_strided_slice %45 {offsets = [0, 24], sizes = [48, 8], strides = [1, 1]} : vector<48x32xf32> to vector<48x8xf32>
    %64 = vector.extract_strided_slice %46 {offsets = [0, 24], sizes = [48, 8], strides = [1, 1]} : vector<48x32xf32> to vector<48x8xf32>
    %cst_20 = arith.constant dense<0.000000e+00> : vector<48x48xf32>
    %65 = tpu.matmul %63, %64, %cst_20 {dimension_numbers = #tpu.dot_dimension_numbers<[1], [1], [0], [0], [0, 0, 1, 0], [], []>} : vector<48x8xf32>, vector<48x8xf32>, vector<48x48xf32> -> vector<48x48xf32>
    %66 = arith.addf %65, %17 : vector<48x48xf32>
    %c144 = arith.constant 144 : index
    %c0_21 = arith.constant 0 : index
    %67 = vector.load %arg10[%c144, %c0_21] : memref<192x48xf32, #tpu.memory_space<vmem>>, vector<48x48xf32>
    tpu.vector_store %arg10[%c144, %c0_21], %66 {strides = array<i32>} : memref<192x48xf32, #tpu.memory_space<vmem>>, vector<48x48xf32>,
    %c0_22 = arith.constant 0 : index
    %c0_23 = arith.constant 0 : index
    %68 = vector.load %arg10[%c0_22, %c0_23] : memref<192x48xf32, #tpu.memory_space<vmem>>, vector<192x48xf32>
    %cst_24 = arith.constant dense<0xFF800000> : vector<192xf32>
    %69 = vector.multi_reduction <maximumf>, %68, %cst_24 [1] : vector<192x48xf32> to vector<192xf32>
    %70 = vector.shape_cast %69 : vector<192xf32> to vector<192x1xf32>
    %71 = vector.broadcast %70 : vector<192x1xf32> to vector<192x48xf32>
    %72 = arith.subf %68, %71 : vector<192x48xf32>
    %73 = math.exp %72 : vector<192x48xf32>
    %cst_25 = arith.constant dense<0.000000e+00> : vector<192xf32>
    %74 = vector.multi_reduction <add>, %73, %cst_25 [1] : vector<192x48xf32> to vector<192xf32>
    %75 = vector.shape_cast %74 : vector<192xf32> to vector<192x1xf32>
    %76 = vector.broadcast %75 : vector<192x1xf32> to vector<192x48xf32>
    %77 = arith.divf %73, %76 : vector<192x48xf32>
    %78 = vector.extract_strided_slice %77 {offsets = [0, 0], sizes = [48, 48], strides = [1, 1]} : vector<192x48xf32> to vector<48x48xf32>
    %79 = vector.extract_strided_slice %47 {offsets = [0, 0], sizes = [48, 8], strides = [1, 1]} : vector<48x32xf32> to vector<48x8xf32>
    %cst_26 = arith.constant dense<0.000000e+00> : vector<48x8xf32>
    %80 = tpu.matmul %78, %79, %cst_26 {dimension_numbers = #tpu.dot_dimension_numbers<[1], [0], [0], [1], [0, 0, 1, 1], [], []>} : vector<48x48xf32>, vector<48x8xf32>, vector<48x8xf32> -> vector<48x8xf32>
    %81 = vector.extract_strided_slice %77 {offsets = [48, 0], sizes = [48, 48], strides = [1, 1]} : vector<192x48xf32> to vector<48x48xf32>
    %82 = vector.extract_strided_slice %47 {offsets = [0, 8], sizes = [48, 8], strides = [1, 1]} : vector<48x32xf32> to vector<48x8xf32>
    %cst_27 = arith.constant dense<0.000000e+00> : vector<48x8xf32>
    %83 = tpu.matmul %81, %82, %cst_27 {dimension_numbers = #tpu.dot_dimension_numbers<[1], [0], [0], [1], [0, 0, 1, 1], [], []>} : vector<48x48xf32>, vector<48x8xf32>, vector<48x8xf32> -> vector<48x8xf32>
    %84 = vector.extract_strided_slice %77 {offsets = [96, 0], sizes = [48, 48], strides = [1, 1]} : vector<192x48xf32> to vector<48x48xf32>
    %85 = vector.extract_strided_slice %47 {offsets = [0, 16], sizes = [48, 8], strides = [1, 1]} : vector<48x32xf32> to vector<48x8xf32>
    %cst_28 = arith.constant dense<0.000000e+00> : vector<48x8xf32>
    %86 = tpu.matmul %84, %85, %cst_28 {dimension_numbers = #tpu.dot_dimension_numbers<[1], [0], [0], [1], [0, 0, 1, 1], [], []>} : vector<48x48xf32>, vector<48x8xf32>, vector<48x8xf32> -> vector<48x8xf32>
    %87 = vector.extract_strided_slice %77 {offsets = [144, 0], sizes = [48, 48], strides = [1, 1]} : vector<192x48xf32> to vector<48x48xf32>
    %88 = vector.extract_strided_slice %47 {offsets = [0, 24], sizes = [48, 8], strides = [1, 1]} : vector<48x32xf32> to vector<48x8xf32>
    %cst_29 = arith.constant dense<0.000000e+00> : vector<48x8xf32>
    %89 = tpu.matmul %87, %88, %cst_29 {dimension_numbers = #tpu.dot_dimension_numbers<[1], [0], [0], [1], [0, 0, 1, 1], [], []>} : vector<48x48xf32>, vector<48x8xf32>, vector<48x8xf32> -> vector<48x8xf32>
    %90 = tpu.concatenate %80, %83, %86, %89 in 1 : vector<48x8xf32>, vector<48x8xf32>, vector<48x8xf32>, vector<48x8xf32> -> vector<48x32xf32>
    %cst_30 = arith.constant dense<0.000000e+00> : vector<48x32xf32>
    %91 = tpu.matmul %90, %3, %cst_30 {dimension_numbers = #tpu.dot_dimension_numbers<[1], [0], [0], [1], [0, 0, 1, 1], [], []>} : vector<48x32xf32>, vector<32x32xf32>, vector<48x32xf32> -> vector<48x32xf32>
    %92 = vector.broadcast %7 : vector<1x32xf32> to vector<48x32xf32>
    %93 = arith.addf %91, %92 : vector<48x32xf32>
    %94 = arith.addf %39, %93 : vector<48x32xf32>
    %cst_31 = arith.constant dense<0.000000e+00> : vector<48xf32>
    %95 = vector.multi_reduction <add>, %94, %cst_31 [1] : vector<48x32xf32> to vector<48xf32>
    %96 = vector.shape_cast %95 : vector<48xf32> to vector<48x1xf32>
    %cst_32 = arith.constant 3.200000e+01 : f32
    %97 = vector.broadcast %cst_32 : f32 to vector<48x1xf32>
    %98 = arith.divf %96, %97 : vector<48x1xf32>
    %99 = vector.broadcast %98 : vector<48x1xf32> to vector<48x32xf32>
    %100 = arith.subf %94, %99 : vector<48x32xf32>
    %101 = arith.mulf %100, %100 : vector<48x32xf32>
    %cst_33 = arith.constant dense<0.000000e+00> : vector<48xf32>
    %102 = vector.multi_reduction <add>, %101, %cst_33 [1] : vector<48x32xf32> to vector<48xf32>
    %103 = vector.shape_cast %102 : vector<48xf32> to vector<48x1xf32>
    %cst_34 = arith.constant 3.200000e+01 : f32
    %104 = vector.broadcast %cst_34 : f32 to vector<48x1xf32>
    %105 = arith.divf %103, %104 : vector<48x1xf32>
    %106 = vector.broadcast %98 : vector<48x1xf32> to vector<48x32xf32>
    %107 = arith.subf %94, %106 : vector<48x32xf32>
    %cst_35 = arith.constant 9.99999974E-6 : f32
    %108 = vector.broadcast %cst_35 : f32 to vector<48x1xf32>
    %109 = arith.addf %105, %108 : vector<48x1xf32>
    %110 = math.rsqrt %109 : vector<48x1xf32>
    %111 = vector.broadcast %110 : vector<48x1xf32> to vector<48x32xf32>
    %112 = arith.mulf %107, %111 : vector<48x32xf32>
    %113 = vector.broadcast %12 : vector<1x32xf32> to vector<48x32xf32>
    %114 = arith.mulf %112, %113 : vector<48x32xf32>
    %115 = vector.broadcast %13 : vector<1x32xf32> to vector<48x32xf32>
    %116 = arith.addf %114, %115 : vector<48x32xf32>
    %cst_36 = arith.constant dense<0.000000e+00> : vector<48x64xf32>
    %117 = tpu.matmul %116, %4, %cst_36 {dimension_numbers = #tpu.dot_dimension_numbers<[1], [0], [0], [1], [0, 0, 1, 1], [], []>} : vector<48x32xf32>, vector<32x64xf32>, vector<48x64xf32> -> vector<48x64xf32>
    %118 = vector.broadcast %8 : vector<1x64xf32> to vector<48x64xf32>
    %119 = arith.addf %117, %118 : vector<48x64xf32>
    %120 = arith.mulf %119, %119 : vector<48x64xf32>
    %121 = arith.mulf %119, %120 : vector<48x64xf32>
    %cst_37 = arith.constant 4.471500e-02 : f32
    %122 = vector.broadcast %cst_37 : f32 to vector<48x64xf32>
    %123 = arith.mulf %122, %121 : vector<48x64xf32>
    %124 = arith.addf %119, %123 : vector<48x64xf32>
    %cst_38 = arith.constant 0.797884583 : f32
    %125 = vector.broadcast %cst_38 : f32 to vector<48x64xf32>
    %126 = arith.mulf %125, %124 : vector<48x64xf32>
    %127 = math.tanh %126 : vector<48x64xf32>
    %cst_39 = arith.constant 1.000000e+00 : f32
    %128 = vector.broadcast %cst_39 : f32 to vector<48x64xf32>
    %129 = arith.addf %128, %127 : vector<48x64xf32>
    %cst_40 = arith.constant 5.000000e-01 : f32
    %130 = vector.broadcast %cst_40 : f32 to vector<48x64xf32>
    %131 = arith.mulf %130, %129 : vector<48x64xf32>
    %132 = arith.mulf %119, %131 : vector<48x64xf32>
    %cst_41 = arith.constant dense<0.000000e+00> : vector<48x32xf32>
    %133 = tpu.matmul %132, %5, %cst_41 {dimension_numbers = #tpu.dot_dimension_numbers<[1], [0], [0], [1], [0, 0, 1, 1], [], []>} : vector<48x64xf32>, vector<64x32xf32>, vector<48x32xf32> -> vector<48x32xf32>
    %134 = vector.broadcast %9 : vector<1x32xf32> to vector<48x32xf32>
    %135 = arith.addf %133, %134 : vector<48x32xf32>
    %136 = arith.addf %116, %135 : vector<48x32xf32>
    %cst_42 = arith.constant dense<0.000000e+00> : vector<48xf32>
    %137 = vector.multi_reduction <add>, %136, %cst_42 [1] : vector<48x32xf32> to vector<48xf32>
    %138 = vector.shape_cast %137 : vector<48xf32> to vector<48x1xf32>
    %cst_43 = arith.constant 3.200000e+01 : f32
    %139 = vector.broadcast %cst_43 : f32 to vector<48x1xf32>
    %140 = arith.divf %138, %139 : vector<48x1xf32>
    %141 = vector.broadcast %140 : vector<48x1xf32> to vector<48x32xf32>
    %142 = arith.subf %136, %141 : vector<48x32xf32>
    %143 = arith.mulf %142, %142 : vector<48x32xf32>
    %cst_44 = arith.constant dense<0.000000e+00> : vector<48xf32>
    %144 = vector.multi_reduction <add>, %143, %cst_44 [1] : vector<48x32xf32> to vector<48xf32>
    %145 = vector.shape_cast %144 : vector<48xf32> to vector<48x1xf32>
    %cst_45 = arith.constant 3.200000e+01 : f32
    %146 = vector.broadcast %cst_45 : f32 to vector<48x1xf32>
    %147 = arith.divf %145, %146 : vector<48x1xf32>
    %148 = vector.broadcast %140 : vector<48x1xf32> to vector<48x32xf32>
    %149 = arith.subf %136, %148 : vector<48x32xf32>
    %cst_46 = arith.constant 9.99999974E-6 : f32
    %150 = vector.broadcast %cst_46 : f32 to vector<48x1xf32>
    %151 = arith.addf %147, %150 : vector<48x1xf32>
    %152 = math.rsqrt %151 : vector<48x1xf32>
    %153 = vector.broadcast %152 : vector<48x1xf32> to vector<48x32xf32>
    %154 = arith.mulf %149, %153 : vector<48x32xf32>
    %155 = vector.broadcast %14 : vector<1x32xf32> to vector<48x32xf32>
    %156 = arith.mulf %154, %155 : vector<48x32xf32>
    %157 = vector.broadcast %15 : vector<1x32xf32> to vector<48x32xf32>
    %158 = arith.addf %156, %157 : vector<48x32xf32>
    %c0_47 = arith.constant 0 : index
    %c0_48 = arith.constant 0 : index
    %159 = vector.load %arg6[%c0_47, %c0_48] : memref<8x48xf32, #tpu.memory_space<vmem>>, vector<8x48xf32>
    %cst_49 = arith.constant dense<0.000000e+00> : vector<8x32xf32>
    %160 = tpu.matmul %159, %158, %cst_49 {dimension_numbers = #tpu.dot_dimension_numbers<[1], [0], [0], [1], [0, 0, 1, 1], [], []>} : vector<8x48xf32>, vector<48x32xf32>, vector<8x32xf32> -> vector<8x32xf32>
    %cst_50 = arith.constant 0.000000e+00 : f32
    %161 = vector.broadcast %cst_50 : f32 to vector<8x96xf32>
    %162 = tpu.concatenate %160, %161 in 1 : vector<8x32xf32>, vector<8x96xf32> -> vector<8x128xf32>
    %c0_51 = arith.constant 0 : index
    %c0_52 = arith.constant 0 : index
    %163 = vector.load %arg9[%c0_51, %c0_52] : memref<8x128xf32, #tpu.memory_space<vmem>>, vector<8x128xf32>
    tpu.vector_store %arg9[%c0_51, %c0_52], %162 {strides = array<i32>} : memref<8x128xf32, #tpu.memory_space<vmem>>, vector<8x128xf32>,
    return
  }
  func.func @transform_0(%arg0: i32, %arg1: memref<5xi32, #tpu.memory_space<smem>>, %arg2: memref<5xi32, #tpu.memory_space<smem>>, %arg3: memref<5xi32, #tpu.memory_space<smem>>) -> (i32, i32) {
    %c0_i32 = arith.constant 0 : i32
    %c0_i32_0 = arith.constant 0 : i32
    %c0_i32_1 = arith.constant 0 : i32
    return %c0_i32, %c0_i32_0 : i32, i32
  }
  func.func @transform_1(%arg0: i32, %arg1: memref<5xi32, #tpu.memory_space<smem>>, %arg2: memref<5xi32, #tpu.memory_space<smem>>, %arg3: memref<5xi32, #tpu.memory_space<smem>>) -> (i32, i32) {
    %c0_i32 = arith.constant 0 : i32
    %c0_i32_0 = arith.constant 0 : i32
    %c0_i32_1 = arith.constant 0 : i32
    return %c0_i32, %c0_i32_0 : i32, i32
  }
  func.func @transform_2(%arg0: i32, %arg1: memref<5xi32, #tpu.memory_space<smem>>, %arg2: memref<5xi32, #tpu.memory_space<smem>>, %arg3: memref<5xi32, #tpu.memory_space<smem>>) -> (i32, i32) {
    %c0_i32 = arith.constant 0 : i32
    %c0_i32_0 = arith.constant 0 : i32
    %c0_i32_1 = arith.constant 0 : i32
    return %c0_i32, %c0_i32_0 : i32, i32
  }
  func.func @transform_3(%arg0: i32, %arg1: memref<5xi32, #tpu.memory_space<smem>>, %arg2: memref<5xi32, #tpu.memory_space<smem>>, %arg3: memref<5xi32, #tpu.memory_space<smem>>) -> (i32, i32) {
    %c0_i32 = arith.constant 0 : i32
    %c0_i32_0 = arith.constant 0 : i32
    %c0_i32_1 = arith.constant 0 : i32
    return %c0_i32, %c0_i32_0 : i32, i32
  }
  func.func @transform_4(%arg0: i32, %arg1: memref<5xi32, #tpu.memory_space<smem>>, %arg2: memref<5xi32, #tpu.memory_space<smem>>, %arg3: memref<5xi32, #tpu.memory_space<smem>>) -> (i32, i32) {
    %c0_i32 = arith.constant 0 : i32
    %c0_i32_0 = arith.constant 0 : i32
    %c0_i32_1 = arith.constant 0 : i32
    return %c0_i32, %c0_i32_0 : i32, i32
  }
  func.func @transform_5(%arg0: i32, %arg1: memref<5xi32, #tpu.memory_space<smem>>, %arg2: memref<5xi32, #tpu.memory_space<smem>>, %arg3: memref<5xi32, #tpu.memory_space<smem>>) -> (i32, i32) {
    %c0_i32 = arith.constant 0 : i32
    %c0_i32_0 = arith.constant 0 : i32
    %c0_i32_1 = arith.constant 0 : i32
    return %c0_i32, %c0_i32_0 : i32, i32
  }
}

</mosaic_0001>

<bundles_post_ra>
// kernel: tpu_custom_call.1
= control target key start
LH: loop header
LB: loop body
LE: loop exit
PB: predicated region body
PF: predicated region fallthrough
CT: control target
= control target key end

     0   :  { %s4221_s0 = inlined_call_operand.vmem [shape: s32[5], index: 0, kind: input, shape index: {}]   ;;  %s4222_s3 = inlined_call_operand.vmem [shape: f32[48,32], index: 3, kind: input, shape index: {}]   ;;  %s4223_s4 = inlined_call_operand.vmem [shape: f32[48,48], index: 4, kind: input, shape index: {}]   ;;  %s4224_s5 = inlined_call_operand.vmem [shape: f32[8,48], index: 5, kind: input, shape index: {}]   ;;  %s4225_s6 = inlined_call_operand.hbm [shape: f32[64,512], index: 6, kind: input, shape index: {}]   ;;  %s4226_s7 = inlined_call_operand.vmem [shape: f32[8,128], index: 7, kind: input, shape index: {}]   ;;  %s4227_s8 = inlined_call_operand.hbm [shape: f32[8,128], index: 8, kind: output, shape index: {}]   ;;  %s4228_s1 = inlined_call_operand.vmem [shape: s32[5], index: 1, kind: input, shape index: {}]   ;;  %s4229_s2 = inlined_call_operand.vmem [shape: s32[5], index: 2, kind: input, shape index: {}]  }
   0x1   :  { %s13_s29 = sshll.u32 %s4221_s0, 4  ;;  %s17_s10 = sshll.u32 %s4228_s1, 4  ;;  %s14_s29 = int_to_ptr.vmem [resolvable:$true] %s13_s29  ;;  %s18_s10 = int_to_ptr.vmem [resolvable:$true] %s17_s10 }
   0x2   :  { %s3186_s11 = scalar_lea.vmem %s14_s29, 16  ;;  %p3191_p1 = scmp.lt.s32.totalorder %s14_s29, %s14_s29 }
   0x3   :  { %p3187_p0 = scmp.ne.s32.totalorder %s14_s29, %s3186_s11  ;;  %p3192_p2 = scmp.lt.s32.totalorder %s3186_s11, %s3186_s11 }
   0x5   :  { %p3193_p3 = por %p3192_p2, %p3191_p1 }
   0x7   :  { %p3194_p4 = pnand %p3193_p3, %p3187_p0 }
   0x9   :  { %3197 = shalt.err (!%p3194_p4)  }
   0xa   :  { %s3268_s12 = smov [#allocation4]   ;;  %s3198_s13 = scalar_lea.vmem %s18_s10, 16 }
   0xb   :  { %16 = dma.vmem_to_smem %s14_s29, 16, %s3268_s12, [#allocation3] }
   0xc   :  { %p3199_p5 = scmp.ne.s32.totalorder %s18_s10, %s3198_s13  ;;  %p3203_p6 = scmp.lt.s32.totalorder %s18_s10, %s18_s10 }
   0xd   :  { %p3204_p7 = scmp.lt.s32.totalorder %s3198_s13, %s3198_s13 }
   0xf   :  { %p3205_p8 = por %p3204_p7, %p3203_p6 }
  0x11   :  { %p3206_p9 = pnand %p3205_p8, %p3199_p5 }
  0x13   :  { %3209 = shalt.err (!%p3206_p9)  }
  0x14   :  { %s3269_s0 = smov [#allocation5]   ;;  %s21_s15 = sshll.u32 %s4229_s2, 4  ;;  %s22_s15 = int_to_ptr.vmem [resolvable:$true] %s21_s15 }
  0x15   :  { %20 = dma.vmem_to_smem %s18_s10, 16, %s3269_s0, [#allocation3] }
  0x16   :  { %s3210_s16 = scalar_lea.vmem %s22_s15, 16  ;;  %p3215_p11 = scmp.lt.s32.totalorder %s22_s15, %s22_s15 }
  0x17   :  { %p3211_p10 = scmp.ne.s32.totalorder %s22_s15, %s3210_s16  ;;  %p3216_p12 = scmp.lt.s32.totalorder %s3210_s16, %s3210_s16 }
  0x19   :  { %p3217_p13 = por %p3216_p12, %p3215_p11 }
  0x1b   :  { %p3218_p0 = pnand %p3217_p13, %p3211_p10 }
  0x1d   :  { %3221 = shalt.err (!%p3218_p0)  }
  0x1e   :  { %s3270_s17 = smov [#allocation6]  }
  0x1f   :  { %24 = dma.vmem_to_smem %s22_s15, 16, %s3270_s17, [#allocation3] }
  0x20   :  { %3262 = dma.done.wait [#allocation3], 48 }
  0x21   :  { %3263 = vsyncadd [#allocation3], 4294967248 }
  0x22   :  { %26 = sfence }
  0x23   :  { %27 = vsyncpa [#allocation8], 0 }
  0x24   :  { %28 = vsyncpa [#allocation9], 0  ;;  %s3271_s18 = smov [#allocation7]  }
  0x25   :  { %s40_s19 = sshll.u32 %s3271_s18, 4  ;;  %s41_s19 = int_to_ptr.vmem [resolvable:$true] %s40_s19 }
  0x26   :  { %s3230_s20 = scalar_lea.vmem %s41_s19, 4096  ;;  %p3235_p2 = scmp.lt.s32.totalorder %s41_s19, %s41_s19 }
  0x27   :  { %p3231_p1 = scmp.ne.s32.totalorder %s41_s19, %s3230_s20  ;;  %p3236_p3 = scmp.lt.s32.totalorder %s3230_s20, %s3230_s20 }
  0x29   :  { %p3237_p4 = por %p3236_p3, %p3235_p2 }
  0x2b   :  { %p3238_p5 = pnand %p3237_p4, %p3231_p1 }
  0x2d   :  { %3241 = shalt.err (!%p3238_p5)
}
  0x2e   :  { %s3272_s2 = smov 512   ;;  %s3273_s21 = smov 32  }
  0x2f   :  { %46 = dma.hbm_to_vmem [thread:$0]  %s4225_s6, 4096, %s41_s19, [#allocation8], %s3272_s2, %s3272_s2, %s3273_s21  }
  0x30   :  { %3264 = dma.done.wait [#allocation8], 4096  }
  0x31   :  { %3265 = vsyncadd [#allocation8], 4294963200  ;;  %vm85_vm0 = vcmask 261120   ;;  %v73_v0 = vld [vmem:[%s4222_s3] sm:$0xff]  ;;  %v75_v1 = vld [vmem:[%s4222_s3 + $0x10] sm:$0xff]  ;;  %v165_v53 = vlaneseq  ;;  %s3274_s0 = smov 88  }
  0x32   :  { %v74_v2 = vld [vmem:[%s4222_s3 + $0x8] sm:$0xff]  ;;  %v86_v3 = vsel %vm85_vm0, %v73_v0, 0.0  ;;  %v92_v4 = vsel %vm85_vm0, %v75_v1, 0.0  ;;  %v76_v5 = vld [vmem:[%s4222_s3 + $0x18] sm:$0xff]  ;;  %v77_v8 = vld [vmem:[%s4222_s3 + $0x20] sm:$0xff]  ;;  %s3275_s1 = smov 96  }
  0x33   :  { %87 = vadd.xlane.f32.xlu0 %v86_v3  ;;  %93 = vadd.xlane.f32.xlu1 %v92_v4  ;;  %v89_v6 = vsel %vm85_vm0, %v74_v2, 0.0  ;;  %v95_v7 = vsel %vm85_vm0, %v76_v5, 0.0  ;;  %v78_v9 = vld [vmem:[%s4222_s3 + $0x28] sm:$0xff]  ;;  %v98_v10 = vsel %vm85_vm0, %v77_v8, 0.0  ;;  %v64_v42 = vld [vmem:[#allocation7 + $0x60] sm:$0xff]  ;;  %v3403_v60 = vshrl.u32 %v165_v53, 7 }
  0x34   :  { %v101_v11 = vsel %vm85_vm0, %v78_v9, 0.0  ;;  %v60_v43 = vld [vmem:[#allocation7 + $0x40] sm:$0xff]  ;;  %2759 = vmatprep.subr.mxu0 %v64_v42  ;;  %vm326_vm1 = vcmask 64512   ;;  %s3276_s14 = smov 120   ;;  %s3277_s15 = smov 80   ;;  %vm452_vm2 = vcmask 392192  }
  0x35   :  { %2760 = vmatpush3.msra.mxu0 %v64_v42  ;;  %v56_v44 = vld [vmem:[#allocation7 + $0x20] sm:$0xff]  ;;  %v177_v4 = vsub.s32 3, %v3403_v60  ;;  %s3278_s16 = smov 72   ;;  %s3279_s17 = smov 112   ;;  %vm1796_vm3 = vcmask 130048   ;;  %vm1803_vm4 = vcmask 195584  }
  0x36   :  { %2761 = vmatprep.subr.mxu0 %v60_v43  ;;  %v52_v45 = vld [vmem:[#allocation7] sm:$0xff]  ;;  %s3280_s18 = smov 104   ;;  %s3281_s19 = smov 56   ;;  %vm2206_vm5 = vcmask 523264   ;;  %vm3289_vm6 = vmmov 0  }
  0x37   :  { %90 = vadd.xlane.f32.xlu0 %v89_v6  ;;  %96 = vadd.xlane.f32.xlu1 %v95_v7  ;;  %s3282_s20 = smov 64   ;;  %s3283_s2 = smov 48  }
  0x38   :  { %2762 = vmatpush3.msra.mxu0 %v60_v43  ;;  %s3284_s22 = smov 40   ;;  %s3286_s12 = smov 16  }
  0x39   :  { %2763 = vmatprep.subr.mxu0 %v56_v44  ;;  %s3287_s3 = smov 24  }
  0x3a   :  { %2764 = vmatpush3.msra.mxu0 %v56_v44 }
  0x3b   :  { %99 = vadd.xlane.f32.xlu0 %v98_v10  ;;  %102 = vadd.xlane.f32.xlu1 %v101_v11 }
  0x3c   :  { %2765 = vmatprep.subr.mxu0 %v52_v45 }
  0x3d   :  { %2766 = vmatpush3.msra.mxu0 %v52_v45 }
  0xbc   :  { %v88_v12 = vpop.xlane.xlu0 %87  ;;  %v94_v13 = vpop.xlane.xlu1 %93 }
  0xbd   :  { %v105_v14 = vmul.f32 0.03125, %v88_v12  ;;  %v107_v15 = vmul.f32 0.03125, %v94_v13 }
  0xbf   :  { %v3373_v16 = vsub.f32 %v73_v0, %v105_v14  ;;  %v3375_v17 = vsub.f32 %v75_v1, %v107_v15  ;;  %v167_v1 = vsub.s32 2, %v3403_v60 }
  0xc0   :  { %v91_v18 = vpop.xlane.xlu0 %90  ;;  %v97_v19 = vpop.xlane.xlu1 %96 }
  0xc1   :  { %v106_v20 = vmul.f32 0.03125, %v91_v18  ;;  %v108_v21 = vmul.f32 0.03125, %v97_v19  ;;  %v117_v22 = vmul.f32 %v3373_v16, %v3373_v16  ;;  %v119_v23 = vmul.f32 %v3375_v17, %v3375_v17 }
  0xc3   :  { %v3381_v24 = vsub.f32 %v74_v2, %v106_v20  ;;  %v3383_v25 = vsub.f32 %v76_v5, %v108_v21  ;;  %v123_v26 = vsel %vm85_vm0, %v117_v22, 0.0  ;;  %v129_v29 = vsel %vm85_vm0, %v119_v23, 0.0  ;;  %v72_v2 = vld [vmem:[%s4226_s7] sm:$0xff] }
  0xc4   :  { %124 = vadd.xlane.f32.xlu0 %v123_v26  ;;  %v100_v27 = vpop.xlane.xlu0 %99  ;;  %v103_v28 = vpop.xlane.xlu1 %102  ;;  %v168_v5 = vrot.slane %v72_v2, %v167_v1 }
  0xc5   :  { %v109_v30 = vmul.f32 0.03125, %v100_v27  ;;  %v110_v31 = vmul.f32 0.03125, %v103_v28  ;;  %v118_v32 = vmul.f32 %v3381_v24, %v3381_v24  ;;  %v120_v33 = vmul.f32 %v3383_v25, %v3383_v25 }
  0xc7   :  { %v3391_v34 = vsub.f32 %v77_v8, %v109_v30  ;;  %v3393_v35 = vsub.f32 %v78_v9, %v110_v31  ;;  %v126_v36 = vsel %vm85_vm0, %v118_v32, 0.0  ;;  %v132_v37 = vsel %vm85_vm0, %v120_v33, 0.0 }
  0xc8   :  { %130 = vadd.xlane.f32.xlu0 %v129_v29  ;;  %127 = vadd.xlane.f32.xlu1 %v126_v36  ;;  %v178_v8 = vrot.slane %v72_v2, %v177_v4  ;;  %v187_v31 = vsub.s32 0, %v3403_v60 }
  0xc9   :  { %v121_v38 = vmul.f32 %v3391_v34, %v3391_v34  ;;  %v122_v39 = vmul.f32 %v3393_v35, %v3393_v35 }
  0xca   :  { %v3441_v32 = vrot.slane %v72_v2, %v187_v31 }
  0xcb   :  { %v135_v40 = vsel %vm85_vm0, %v121_v38, 0.0  ;;  %v138_v41 = vsel %vm85_vm0, %v122_v39, 0.0 }
  0xcc   :  { %133 = vadd.xlane.f32.xlu1 %v132_v37  ;;  %136 = vadd.xlane.f32.xlu0 %v135_v40 }
  0xd0   :  { %139 = vadd.xlane.f32.xlu1 %v138_v41 }
 0x14d   :  { %v125_v46 = vpop.xlane.xlu0 %124 }
 0x14e   :  { %v141_v47 = vmul.f32 0.03125, %v125_v46 }
 0x150   :  { %v147_v48 = vadd.f32 1e-05, %v141_v47 }
 0x151   :  { %v128_v49 = vpop.xlane.xlu1 %127  ;;  %v131_v50 = vpop.xlane.xlu0 %130 }
 0x152   :  { %3041 = vrsqrt.f32 %v147_v48  ;;  %v142_v51 = vmul.f32 0.03125, %v128_v49  ;;  %v143_v52 = vmul.f32 0.03125, %v131_v50 }
 0x154   :  { %v148_v54 = vadd.f32 1e-05, %v142_v51  ;;  %v149_v55 = vadd.f32 1e-05, %v143_v52 }
 0x155   :  { %v134_v56 = vpop.xlane.xlu1 %133  ;;  %v137_v57 = vpop.xlane.xlu0 %136 }
 0x156   :  { %3043 = vrsqrt.f32 %v148_v54  ;;  %v144_v58 = vmul.f32 0.03125, %v134_v56  ;;  %v145_v59 = vmul.f32 0.03125, %v137_v57 }
 0x157   :  { %3045 = vrsqrt.f32 %v149_v55 }
 0x158   :  { %v150_v61 = vadd.f32 1e-05, %v144_v58  ;;  %v151_v62 = vadd.f32 1e-05, %v145_v59 }
 0x159   :  { %v140_v63 = vpop.xlane.xlu1 %139 }
 0x15a   :  { %3047 = vrsqrt.f32 %v150_v61  ;;  %v146_v0 = vmul.f32 0.03125, %v140_v63 }
 0x15b   :  { %3049 = vrsqrt.f32 %v151_v62 }
 0x15c   :  { %v152_v3 = vadd.f32 1e-05, %v146_v0 }
 0x15e   :  { %3051 = vrsqrt.f32 %v152_v3 }
 0x15f   :  { %v3042_v6 = vpop.eup %3041 }
 0x160   :  { %v159_v7 = vmul.f32 %v3042_v6, %v3373_v16 }
 0x162   :  { %v169_v9 = vmul.f32 %v168_v5, %v159_v7 }
 0x163   :  { %v3044_v10 = vpop.eup %3043 }
 0x164   :  { %v3046_v11 = vpop.eup %3045  ;;  %v3411_v12 = vadd.f32 %v178_v8, %v169_v9  ;;  %v160_v13 = vmul.f32 %v3044_v10, %v3381_v24 }
 0x165   :  { %v161_v14 = vmul.f32 %v3046_v11, %v3375_v17 }
 0x166   :  { %2767 = vmatprep.mubr.msk.f32.mxu0 %vm85_vm0, %v3411_v12  ;;  %v170_v15 = vmul.f32 %v168_v5, %v160_v13 }
 0x167   :  { %v3048_v18 = vpop.eup %3047  ;;  %v171_v19 = vmul.f32 %v168_v5, %v161_v14 }
 0x168   :  { %v3050_v20 = vpop.eup %3049  ;;  %v3417_v21 = vadd.f32 %v178_v8, %v170_v15  ;;  %v162_v16 = vmul.f32 %v3048_v18, %v3383_v25 }
 0x169   :  { %v3420_v22 = vadd.f32 %v178_v8, %v171_v19  ;;  %v163_v23 = vmul.f32 %v3050_v20, %v3391_v34 }
 0x16a   :  { %2768 = vmatmul.mubr.msk.f32.vlgmr.msra.gmra.mxu0 %vm85_vm0, %v3417_v21  ;;  %v172_v24 = vmul.f32 %v168_v5, %v162_v16 }
 0x16b   :  { %v3052_v17 = vpop.eup %3051  ;;  %2770 = vmatprep.mubr.msk.f32.mxu0 %vm85_vm0, %v3420_v22  ;;  %v173_v26 = vmul.f32 %v168_v5, %v163_v23 }
 0x16c   :  { %v3427_v27 = vadd.f32 %v178_v8, %v172_v24  ;;  %v164_v28 = vmul.f32 %v3052_v17, %v3393_v35 }
 0x16d   :  { %v3430_v29 = vadd.f32 %v178_v8, %v173_v26 }
 0x16e   :  { %2771 = vmatmul.mubr.msk.f32.gmra.mxu0 %vm85_vm0, %v3427_v27  ;;  %v174_v25 = vmul.f32 %v168_v5, %v164_v28 }
 0x16f   :  { %2773 = vmatprep.mubr.msk.f32.mxu0 %vm85_vm0, %v3430_v29 }
 0x170   :  { %v3436_v30 = vadd.f32 %v178_v8, %v174_v25 }
 0x172   :  { %2774 = vmatmul.mubr.msk.f32.gmra.mxu0 %vm85_vm0, %v3436_v30 }
 0x22a   :  { %v2769_v33 = vpop.f32.mrf.mxu0 }
 0x22b   :  { %v3444_v34 = vadd.f32 %v2769_v33, %v3441_v32 }
 0x22c   :  { %v273_v35 = vpop.f32.mrf.mxu0 }
 0x22d   :  { %v3447_v36 = vadd.f32 %v273_v35, %v3441_v32  ;;  %473 = vrot.lane.b32.xlu1 %v3444_v34, %s3274_s0  ;;  %316 = vrot.lane.b32.xlu0 %v3444_v34, %s3275_s1  ;;  %v3463_v40 = vmul.f32 0.35355338, %v3444_v34 }
 0x22e   :  { %v2772_v38 = vpop.f32.mrf.mxu0 }
 0x22f   :  { %v302_v37 = vmul.f32 0.35355338, %v3447_v36  ;;  %v3460_v39 = vadd.f32 %v2772_v38, %v3441_v32 }
 0x230   :  { %v283_v41 = vpop.f32.mrf.mxu0 }
 0x231   :  { %471 = vrot.lane.b32.xlu1 %v3447_v36, %s3274_s0  ;;  %314 = vrot.lane.b32.xlu0 %v3447_v36, %s3275_s1  ;;  %v3474_v42 = vadd.f32 %v283_v41, %v3441_v32  ;;  %v3503_v48 = vmul.f32 0.35355338, %v3460_v39 }
 0x232   :  { %2788 = vmatprep.mubr.msk.f32.mxu1 %vm326_vm1, %v302_v37  ;;  %v2775_v43 = vpop.f32.mrf.mxu0 }
 0x233   :  { %v3480_v44 = vadd.f32 %v2775_v43, %v3441_v32  ;;  %v3497_v47 = vmul.f32 0.35355338, %v3474_v42 }
 0x234   :  { %v293_v45 = vpop.f32.mrf.mxu0 }
 0x235   :  { %461 = vrot.lane.b32.xlu1 %v3463_v40, %s3276_s14  ;;  %320 = vrot.lane.b32.xlu0 %v3460_v39, %s3275_s1  ;;  %v294_v46 = vadd.f32 %v293_v45, %v3441_v32  ;;  %v3516_v49 = vmul.f32 0.35355338, %v3480_v44 }
 0x237   :  { %v3521_v50 = vmul.f32 0.35355338, %v294_v46 }
 0x239   :  { %477 = vrot.lane.b32.xlu1 %v3460_v39, %s3274_s0  ;;  %626 = vrot.lane.b32.xlu0 %v3460_v39, %s3277_s15 }
 0x23d   :  { %318 = vrot.lane.b32.xlu0 %v3474_v42, %s3275_s1  ;;  %459 = vrot.lane.b32.xlu1 %v302_v37, %s3276_s14 }
 0x241   :  { %324 = vrot.lane.b32.xlu0 %v3480_v44, %s3275_s1  ;;  %475 = vrot.lane.b32.xlu1 %v3474_v42, %s3274_s0 }
 0x245   :  { %630 = vrot.lane.b32.xlu0 %v3480_v44, %s3277_s15  ;;  %481 = vrot.lane.b32.xlu1 %v3480_v44, %s3274_s0 }
 0x249   :  { %779 = vrot.lane.b32.xlu0 %v3480_v44, %s3278_s16  ;;  %322 = vrot.lane.b32.xlu1 %v294_v46, %s3275_s1  ;;  %s3290_s1 = smov [#allocation10]  }
 0x24d   :  { %624 = vrot.lane.b32.xlu0 %v3474_v42, %s3277_s15  ;;  %479 = vrot.lane.b32.xlu1 %v294_v46, %s3274_s0 }
 0x251   :  { %463 = vrot.lane.b32.xlu0 %v3497_v47, %s3276_s14  ;;  %775 = vrot.lane.b32.xlu1 %v3460_v39, %s3278_s16 }
 0x255   :  { %465 = vrot.lane.b32.xlu0 %v3503_v48, %s3276_s14  ;;  %773 = vrot.lane.b32.xlu1 %v3474_v42, %s3278_s16 }
 0x259   :  { %628 = vrot.lane.b32.xlu0 %v294_v46, %s3277_s15  ;;  %622 = vrot.lane.b32.xlu1 %v3444_v34, %s3277_s15 }
 0x25d   :  { %608 = vrot.lane.b32.xlu0 %v302_v37, %s3279_s17  ;;  %771 = vrot.lane.b32.xlu1 %v3444_v34, %s3278_s16 }
 0x261   :  { %757 = vrot.lane.b32.xlu0 %v302_v37, %s3280_s18  ;;  %620 = vrot.lane.b32.xlu1 %v3447_v36, %s3277_s15 }
 0x265   :  { %612 = vrot.lane.b32.xlu0 %v3497_v47, %s3279_s17  ;;  %777 = vrot.lane.b32.xlu1 %v294_v46, %s3278_s16 }
 0x269   :  { %469 = vrot.lane.b32.xlu0 %v3516_v49, %s3276_s14  ;;  %769 = vrot.lane.b32.xlu1 %v3447_v36, %s3278_s16 }
 0x26d   :  { %467 = vrot.lane.b32.xlu0 %v3521_v50, %s3276_s14  ;;  %610 = vrot.lane.b32.xlu1 %v3463_v40, %s3279_s17  ;;  %s2506_s14 = sshll.u32 %s3290_s1, 4  ;;  %s2507_s14 = int_to_ptr.vmem [resolvable:$true] %s2506_s14 }
 0x26e   :  { %s3242_s15 = scalar_lea.vmem %s2507_s14, 128  ;;  %p3247_p7 = scmp.lt.s32.totalorder %s2507_s14, %s2507_s14 }
 0x26f   :  { %p3243_p6 = scmp.ne.s32.totalorder %s2507_s14, %s3242_s15  ;;  %p3248_p8 = scmp.lt.s32.totalorder %s3242_s15, %s3242_s15 }
 0x271   :  { %761 = vrot.lane.b32.xlu0 %v3497_v47, %s3280_s18  ;;  %759 = vrot.lane.b32.xlu1 %v3463_v40, %s3280_s18  ;;  %p3249_p9 = por %p3248_p8, %p3247_p7 }
 0x273   :  { %p3250_p10 = pnand %p3249_p9, %p3243_p6 }
 0x275   :  { %616 = vrot.lane.b32.xlu0 %v3521_v50, %s3279_s17  ;;  %614 = vrot.lane.b32.xlu1 %v3503_v48, %s3279_s17 }
 0x279   :  { %765 = vrot.lane.b32.xlu0 %v3521_v50, %s3280_s18  ;;  %763 = vrot.lane.b32.xlu1 %v3503_v48, %s3280_s18 }
 0x27d   :  { %1335 = vrot.lane.b32.xlu0 %v3480_v44, %s3281_s19  ;;  %618 = vrot.lane.b32.xlu1 %v3516_v49, %s3279_s17 }
 0x281   :  { %1333 = vrot.lane.b32.xlu0 %v294_v46, %s3281_s19  ;;  %767 = vrot.lane.b32.xlu1 %v3516_v49, %s3280_s18 }
 0x285   :  { %1331 = vrot.lane.b32.xlu0 %v3460_v39, %s3281_s19  ;;  %1204 = vrot.lane.b32.xlu1 %v3480_v44, %s3282_s20 }
 0x289   :  { %1194 = vrot.lane.b32.xlu0 %v3447_v36, %s3282_s20  ;;  %1202 = vrot.lane.b32.xlu1 %v294_v46, %s3282_s20 }
 0x28d   :  { %1466 = vrot.lane.b32.xlu0 %v3480_v44, %s3283_s2  ;;  %1200 = vrot.lane.b32.xlu1 %v3460_v39, %s3282_s20 }
 0x291   :  { %1464 = vrot.lane.b32.xlu0 %v294_v46, %s3283_s2  ;;  %1198 = vrot.lane.b32.xlu1 %v3474_v42, %s3282_s20 }
 0x295   :  { %1462 = vrot.lane.b32.xlu0 %v3460_v39, %s3283_s2  ;;  %1329 = vrot.lane.b32.xlu1 %v3474_v42, %s3281_s19 }
 0x299   :  { %1460 = vrot.lane.b32.xlu0 %v3474_v42, %s3283_s2  ;;  %1196 = vrot.lane.b32.xlu1 %v3444_v34, %s3282_s20 }
 0x29d   :  { %1327 = vrot.lane.b32.xlu1 %v3444_v34, %s3281_s19 }
 0x29f   :  { %v474_v51 = vpop.permute.xlu1 %473  ;;  %v317_v52 = vpop.permute.xlu0 %316 }
 0x2a1   :  { %1325 = vrot.lane.b32.xlu1 %v3447_v36, %s3281_s19 }
 0x2a3   :  { %v472_v53 = vpop.permute.xlu1 %471  ;;  %v315_v54 = vpop.permute.xlu0 %314 }
 0x2a5   :  { %1597 = vrot.lane.b32.xlu1 %v3480_v44, %s3284_s22 }
 0x2a7   :  { %v462_v55 = vpop.permute.xlu1 %461  ;;  %v321_v56 = vpop.permute.xlu0 %320 }
 0x2a9   :  { %1595 = vrot.lane.b32.xlu1 %v294_v46, %s3284_s22 }
 0x2ab   :  { %v478_v57 = vpop.permute.xlu1 %477  ;;  %v3560_v58 = vpop.permute.xlu0 %626 }
 0x2ad   :  { %1593 = vrot.lane.b32.xlu1 %v3460_v39, %s3284_s22 }
 0x2af   :  { %v319_v59 = vpop.permute.xlu0 %318  ;;  %v460_v61 = vpop.permute.xlu1 %459 }
 0x2b0   :  { %2809 = vmatprep.mubr.msk.f32.mxu0 %vm326_vm1, %v460_v61 }
 0x2b1   :  { %1591 = vrot.lane.b32.xlu1 %v3474_v42, %s3284_s22 }
 0x2b3   :  { %v325_v62 = vpop.permute.xlu0 %324  ;;  %v476_v63 = vpop.permute.xlu1 %475 }
 0x2b4   :  { %2776 = vmatprep.subr.msk.mxu1 %vm326_vm1, %v325_v62 }
 0x2b5   :  { %2777 = vmatpush3.xpose.msk.msra.mxu1 %vm326_vm1, %v325_v62 }
 0x2b7   :  { %v631_v0 = vpop.permute.xlu0 %630  ;;  %v482_v1 = vpop.permute.xlu1 %481 }
 0x2b8   :  { %2797 = vmatprep.subr.msk.mxu0 %vm326_vm1, %v482_v1 }
 0x2b9   :  { %2798 = vmatpush3.xpose.msk.msra.mxu0 %vm326_vm1, %v482_v1 }
 0x2bb   :  { %v780_v2 = vpop.permute.xlu0 %779  ;;  %v323_v3 = vpop.permute.xlu1 %322 }
 0x2bc   :  { %2778 = vmatprep.subr.msk.mxu1 %vm326_vm1, %v323_v3 }
 0x2bd   :  { %2779 = vmatpush3.xpose.msk.msra.mxu1 %vm326_vm1, %v323_v3 }
 0x2be   :  { %2780 = vmatprep.subr.msk.mxu1 %vm326_vm1, %v321_v56 }
 0x2bf   :  { %v625_v4 = vpop.permute.xlu0 %624  ;;  %v480_v5 = vpop.permute.xlu1 %479 }
 0x2c0   :  { %2799 = vmatprep.subr.msk.mxu0 %vm326_vm1, %v480_v5 }
 0x2c1   :  { %2781 = vmatpush3.xpose.msk.msra.mxu1 %vm326_vm1, %v321_v56  ;;  %2800 = vmatpush3.xpose.msk.msra.mxu0 %vm326_vm1, %v480_v5 }
 0x2c2   :  { %2782 = vmatprep.subr.msk.mxu1 %vm326_vm1, %v319_v59  ;;  %2801 = vmatprep.subr.msk.mxu0 %vm326_vm1, %v478_v57 }
 0x2c3   :  { %v464_v6 = vpop.permute.xlu0 %463  ;;  %v776_v7 = vpop.permute.xlu1 %775 }
 0x2c5   :  { %2783 = vmatpush3.xpose.msk.msra.mxu1 %vm326_vm1, %v319_v59  ;;  %2802 = vmatpush3.xpose.msk.msra.mxu0 %vm326_vm1, %v478_v57 }
 0x2c6   :  { %2784 = vmatprep.subr.msk.mxu1 %vm326_vm1, %v317_v52  ;;  %2803 = vmatprep.subr.msk.mxu0 %vm326_vm1, %v476_v63 }
 0x2c7   :  { %v466_v8 = vpop.permute.xlu0 %465  ;;  %v774_v9 = vpop.permute.xlu1 %773 }
 0x2c9   :  { %2785 = vmatpush3.xpose.msk.msra.mxu1 %vm326_vm1, %v317_v52  ;;  %2804 = vmatpush3.xpose.msk.msra.mxu0 %vm326_vm1, %v476_v63  ;;  %v3671_v63 = vld [vmem:[%s4223_s4 + $0x10] sm:$0xff] }
 0x2ca   :  { %2786 = vmatprep.subr.msk.mxu1 %vm326_vm1, %v315_v54  ;;  %2805 = vmatprep.subr.msk.mxu0 %vm326_vm1, %v474_v51 }
 0x2cb   :  { %v629_v10 = vpop.permute.xlu0 %628  ;;  %v623_v11 = vpop.permute.xlu1 %622 }
 0x2cd   :  { %2787 = vmatpush3.xpose.msk.msra.mxu1 %vm326_vm1, %v315_v54  ;;  %2806 = vmatpush3.xpose.msk.msra.mxu0 %vm326_vm1, %v474_v51 }
 0x2ce   :  { %2807 = vmatprep.subr.msk.mxu0 %vm326_vm1, %v472_v53  ;;  %2818 = vmatprep.subr.msk.mxu1 %vm326_vm1, %v631_v0 }
 0x2cf   :  { %v609_v13 = vpop.permute.xlu0 %608  ;;  %v772_v14 = vpop.permute.xlu1 %771 }
 0x2d0   :  { %2789 = vmatmul.mubr.msk.f32.vlgmr.msra.gmra.mxu1 %vm326_vm1, %v3463_v40 }
 0x2d1   :  { %2791 = vmatprep.mubr.msk.f32.mxu1 %vm326_vm1, %v3497_v47  ;;  %2808 = vmatpush3.xpose.msk.msra.mxu0 %vm326_vm1, %v472_v53  ;;  %v3653_v53 = vld [vmem:[%s4223_s4 + $0x8] sm:$0xff] }
 0x2d2   :  { %2819 = vmatpush3.xpose.msk.msra.mxu1 %vm326_vm1, %v631_v0  ;;  %2839 = vmatprep.subr.msk.mxu0 %vm326_vm1, %v780_v2 }
 0x2d3   :  { %2820 = vmatprep.subr.msk.mxu1 %vm326_vm1, %v629_v10  ;;  %v758_v15 = vpop.permute.xlu0 %757  ;;  %v621_v18 = vpop.permute.xlu1 %620 }
 0x2d4   :  { %2792 = vmatmul.mubr.msk.f32.gmra.mxu1 %vm326_vm1, %v3503_v48  ;;  %2810 = vmatmul.mubr.msk.f32.vlgmr.msra.gmra.mxu0 %vm326_vm1, %v462_v55  ;;  %v3658_v55 = vld [vmem:[%s4223_s4] sm:$0xff] }
 0x2d5   :  { %2794 = vmatprep.mubr.msk.f32.mxu1 %vm326_vm1, %v3521_v50  ;;  %2812 = vmatprep.mubr.msk.f32.mxu0 %vm326_vm1, %v464_v6 }
 0x2d6   :  { %2821 = vmatpush3.xpose.msk.msra.mxu1 %vm326_vm1, %v629_v10  ;;  %2840 = vmatpush3.xpose.msk.msra.mxu0 %vm326_vm1, %v780_v2 }
 0x2d7   :  { %2822 = vmatprep.subr.msk.mxu1 %vm326_vm1, %v3560_v58  ;;  %v613_v19 = vpop.permute.xlu0 %612  ;;  %v778_v20 = vpop.permute.xlu1 %777 }
 0x2d8   :  { %2795 = vmatmul.mubr.msk.f32.gmra.mxu1 %vm326_vm1, %v3516_v49  ;;  %2813 = vmatmul.mubr.msk.f32.gmra.mxu0 %vm326_vm1, %v466_v8 }
 0x2d9   :  { %2841 = vmatprep.subr.msk.mxu0 %vm326_vm1, %v778_v20  ;;  %2830 = vmatprep.mubr.msk.f32.mxu1 %vm326_vm1, %v609_v13 }
 0x2da   :  { %2823 = vmatpush3.xpose.msk.msra.mxu1 %vm326_vm1, %v3560_v58  ;;  %2842 = vmatpush3.xpose.msk.msra.mxu0 %vm326_vm1, %v778_v20  ;;  %v3664_v58 = vld [vmem:[%s4223_s4 + $0x18] sm:$0xff] }
 0x2db   :  { %2824 = vmatprep.subr.msk.mxu1 %vm326_vm1, %v625_v4  ;;  %2843 = vmatprep.subr.msk.mxu0 %vm326_vm1, %v776_v7  ;;  %v470_v16 = vpop.permute.xlu0 %469  ;;  %v770_v23 = vpop.permute.xlu1 %769 }
 0x2de   :  { %2825 = vmatpush3.xpose.msk.msra.mxu1 %vm326_vm1, %v625_v4  ;;  %2844 = vmatpush3.xpose.msk.msra.mxu0 %vm326_vm1, %v776_v7  ;;  %v3679_v4 = vld [vmem:[%s4223_s4 + $0x28] sm:$0xff] }
 0x2df   :  { %2826 = vmatprep.subr.msk.mxu1 %vm326_vm1, %v623_v11  ;;  %2845 = vmatprep.subr.msk.mxu0 %vm326_vm1, %v774_v9  ;;  %v468_v24 = vpop.permute.xlu0 %467  ;;  %v611_v17 = vpop.permute.xlu1 %610 }
 0x2e0   :  { %2815 = vmatprep.mubr.msk.f32.mxu0 %vm326_vm1, %v468_v24 }
 0x2e1   :  { %2816 = vmatmul.mubr.msk.f32.gmra.mxu0 %vm326_vm1, %v470_v16 }
 0x2e2   :  { %2827 = vmatpush3.xpose.msk.msra.mxu1 %vm326_vm1, %v623_v11  ;;  %2846 = vmatpush3.xpose.msk.msra.mxu0 %vm326_vm1, %v774_v9  ;;  %v3688_v9 = vld [vmem:[%s4223_s4 + $0x20] sm:$0xff]  ;;  %s3285_s4 = smov 8  }
 0x2e3   :  { %2828 = vmatprep.subr.msk.mxu1 %vm326_vm1, %v621_v18  ;;  %2847 = vmatprep.subr.msk.mxu0 %vm326_vm1, %v772_v14  ;;  %v762_v26 = vpop.permute.xlu0 %761  ;;  %v760_v28 = vpop.permute.xlu1 %759 }
 0x2e4   :  { %2851 = vmatprep.mubr.msk.f32.mxu0 %vm326_vm1, %v758_v15 }
 0x2e6   :  { %2829 = vmatpush3.xpose.msk.msra.mxu1 %vm326_vm1, %v621_v18  ;;  %2848 = vmatpush3.xpose.msk.msra.mxu0 %vm326_vm1, %v772_v14 }
 0x2e7   :  { %2849 = vmatprep.subr.msk.mxu0 %vm326_vm1, %v770_v23  ;;  %v617_v25 = vpop.permute.xlu0 %616  ;;  %v615_v31 = vpop.permute.xlu1 %614 }
 0x2e9   :  { %2831 = vmatmul.mubr.msk.f32.vlgmr.msra.gmra.mxu1 %vm326_vm1, %v611_v17 }
 0x2ea   :  { %2833 = vmatprep.mubr.msk.f32.mxu1 %vm326_vm1, %v613_v19  ;;  %2850 = vmatpush3.xpose.msk.msra.mxu0 %vm326_vm1, %v770_v23 }
 0x2eb   :  { %v766_v33 = vpop.permute.xlu0 %765  ;;  %v764_v35 = vpop.permute.xlu1 %763 }
 0x2ed   :  { %2834 = vmatmul.mubr.msk.f32.gmra.mxu1 %vm326_vm1, %v615_v31  ;;  %2852 = vmatmul.mubr.msk.f32.vlgmr.msra.gmra.mxu0 %vm326_vm1, %v760_v28 }
 0x2ee   :  { %2836 = vmatprep.mubr.msk.f32.mxu1 %vm326_vm1, %v617_v25  ;;  %2854 = vmatprep.mubr.msk.f32.mxu0 %vm326_vm1, %v762_v26 }
 0x2ef   :  { %v1336_v37 = vpop.permute.xlu0 %1335  ;;  %v619_v38 = vpop.permute.xlu1 %618 }
 0x2f0   :  { %2881 = vmatprep.subr.mxu0 %v1336_v37 }
 0x2f1   :  { %2837 = vmatmul.mubr.msk.f32.gmra.mxu1 %vm326_vm1, %v619_v38  ;;  %2855 = vmatmul.mubr.msk.f32.gmra.mxu0 %vm326_vm1, %v764_v35 }
 0x2f2   :  { %2857 = vmatprep.mubr.msk.f32.mxu0 %vm326_vm1, %v766_v33  ;;  %2882 = vmatpush3.msra.mxu0 %v1336_v37 }
 0x2f3   :  { %v1334_v39 = vpop.permute.xlu0 %1333  ;;  %v768_v40 = vpop.permute.xlu1 %767 }
 0x2f4   :  { %2883 = vmatprep.subr.mxu0 %v1334_v39 }
 0x2f5   :  { %2858 = vmatmul.mubr.msk.f32.gmra.mxu0 %vm326_vm1, %v768_v40 }
 0x2f6   :  { %2884 = vmatpush3.msra.mxu0 %v1334_v39 }
 0x2f7   :  { %v1332_v41 = vpop.permute.xlu0 %1331  ;;  %v1205_v42 = vpop.permute.xlu1 %1204 }
 0x2f8   :  { %2860 = vmatprep.subr.mxu1 %v1205_v42  ;;  %2885 = vmatprep.subr.mxu0 %v1332_v41 }
 0x2f9   :  { %2861 = vmatpush3.msra.mxu1 %v1205_v42  ;;  %2886 = vmatpush3.msra.mxu0 %v1332_v41 }
 0x2fb   :  { %v1203_v43 = vpop.permute.xlu1 %1202  ;;  %v1195_v47 = vpop.permute.xlu0 %1194 }
 0x2fc   :  { %2862 = vmatprep.subr.mxu1 %v1203_v43 }
 0x2fd   :  { %2863 = vmatpush3.msra.mxu1 %v1203_v43 }
 0x2ff   :  { %v1201_v44 = vpop.permute.xlu1 %1200  ;;  %v3644_v49 = vpop.permute.xlu0 %1466 }
 0x300   :  { %2864 = vmatprep.subr.mxu1 %v1201_v44 }
 0x301   :  { %2865 = vmatpush3.msra.mxu1 %v1201_v44 }
 0x303   :  { %v1199_v45 = vpop.permute.xlu1 %1198 }
 0x304   :  { %2866 = vmatprep.subr.mxu1 %v1199_v45 }
 0x305   :  { %2867 = vmatpush3.msra.mxu1 %v1199_v45 }
 0x307   :  { %v1330_v46 = vpop.permute.xlu1 %1329 }
 0x308   :  { %2887 = vmatprep.subr.mxu0 %v1330_v46 }
 0x309   :  { %2888 = vmatpush3.msra.mxu0 %v1330_v46 }
 0x30b   :  { %v1197_v48 = vpop.permute.xlu1 %1196 }
 0x30c   :  { %2868 = vmatprep.subr.mxu1 %v1197_v48 }
 0x30d   :  { %2869 = vmatpush3.msra.mxu1 %v1197_v48 }
 0x30e   :  { %2870 = vmatprep.subr.mxu1 %v1195_v47 }
 0x30f   :  { %v1328_v50 = vpop.permute.xlu1 %1327  ;;  %2871 = vmatpush3.msra.mxu1 %v1195_v47 }
 0x310   :  { %2889 = vmatprep.subr.mxu0 %v1328_v50  ;;  %2902 = vmatprep.subr.mxu1 %v3644_v49 }
 0x311   :  { %2890 = vmatpush3.msra.mxu0 %v1328_v50 }
 0x313   :  { %v1326_v51 = vpop.permute.xlu1 %1325 }
 0x314   :  { %2891 = vmatprep.subr.mxu0 %v1326_v51 }
 0x315   :  { %2892 = vmatpush3.msra.mxu0 %v1326_v51 }
 0x317   :  { %v3647_v52 = vpop.permute.xlu1 %1597 }
 0x318   :  { %2923 = vmatprep.subr.mxu0 %v3647_v52 }
 0x390   :  { %v2790_v54 = vpop.f32.mrf.mxu1 }
 0x391   :  { %v429_v56 = vadd.f32 %v2790_v54, %v3653_v53 }
 0x392   :  { %v423_v57 = vpop.f32.mrf.mxu1 }
 0x393   :  { %454 = vst.msk [vmem:[#allocation2 + $0x8] sm:$0xff] %vm452_vm2, %v429_v56  ;;  %v424_v59 = vadd.f32 %v423_v57, %v3658_v55 }
 0x394   :  { %v2793_v61 = vpop.f32.mrf.mxu1  ;;  %v2811_v62 = vpop.f32.mrf.mxu0 }
 0x395   :  { %453 = vst.msk [vmem:[#allocation2] sm:$0xff] %vm452_vm2, %v424_v59  ;;  %v439_v0 = vadd.f32 %v2793_v61, %v3664_v58  ;;  %v579_v1 = vadd.f32 %v2811_v62, %v3653_v53 }
 0x396   :  { %v433_v2 = vpop.f32.mrf.mxu1  ;;  %v573_v3 = vpop.f32.mrf.mxu0 }
 0x397   :  { %456 = vst.msk [vmem:[#allocation2 + $0x18] sm:$0xff] %vm452_vm2, %v439_v0  ;;  %603 = vst.msk [vmem:[#allocation2 + $0x38] sm:$0xff] %vm452_vm2, %v579_v1  ;;  %v434_v5 = vadd.f32 %v433_v2, %v3671_v63  ;;  %v574_v6 = vadd.f32 %v573_v3, %v3658_v55 }
 0x398   :  { %v2796_v7 = vpop.f32.mrf.mxu1  ;;  %v2814_v8 = vpop.f32.mrf.mxu0 }
 0x399   :  { %455 = vst.msk [vmem:[#allocation2 + $0x10] sm:$0xff] %vm452_vm2, %v434_v5  ;;  %602 = vst.msk [vmem:[#allocation2 + $0x30] sm:$0xff] %vm452_vm2, %v574_v6  ;;  %v449_v10 = vadd.f32 %v2796_v7, %v3679_v4  ;;  %v589_v11 = vadd.f32 %v2814_v8, %v3664_v58 }
 0x39a   :  { %v443_v13 = vpop.f32.mrf.mxu1  ;;  %v583_v14 = vpop.f32.mrf.mxu0  ;;  %v3694_v15 = vld [vmem:[#allocation2 + $0x8] sm:$0xff] }
 0x39b   :  { %458 = vst.msk [vmem:[#allocation2 + $0x28] sm:$0xff] %vm452_vm2, %v449_v10  ;;  %605 = vst.msk [vmem:[#allocation2 + $0x48] sm:$0xff] %vm452_vm2, %v589_v11  ;;  %v444_v18 = vadd.f32 %v443_v13, %v3688_v9  ;;  %v584_v19 = vadd.f32 %v583_v14, %v3671_v63  ;;  %v933_v20 = vsel %vm452_vm2, %v3694_v15, -inf }
 0x39c   :  { %934 = vmax.xlane.f32.xlu1 %v933_v20  ;;  %v3712_v26 = vld [vmem:[#allocation2] sm:$0xff] }
 0x39d   :  { %457 = vst.msk [vmem:[#allocation2 + $0x20] sm:$0xff] %vm452_vm2, %v444_v18  ;;  %604 = vst.msk [vmem:[#allocation2 + $0x40] sm:$0xff] %vm452_vm2, %v584_v19  ;;  %v930_v37 = vsel %vm452_vm2, %v3712_v26, -inf }
 0x39e   :  { %v3704_v16 = vld [vmem:[#allocation2 + $0x38] sm:$0xff] }
 0x39f   :  { %v3706_v23 = vld [vmem:[#allocation2 + $0x18] sm:$0xff]  ;;  %v951_v24 = vsel %vm452_vm2, %v3704_v16, -inf }
 0x3a0   :  { %v939_v17 = vsel %vm452_vm2, %v3706_v23, -inf  ;;  %952 = vmax.xlane.f32.xlu0 %v951_v24  ;;  %v3725_v40 = vld [vmem:[#allocation2 + $0x30] sm:$0xff] }
 0x3a1   :  { %940 = vmax.xlane.f32.xlu1 %v939_v17  ;;  %v2817_v28 = vpop.f32.mrf.mxu0  ;;  %v948_v42 = vsel %vm452_vm2, %v3725_v40, -inf  ;;  %v3732_v43 = vld [vmem:[#allocation2 + $0x10] sm:$0xff] }
 0x3a2   :  { %v599_v25 = vadd.f32 %v2817_v28, %v3679_v4  ;;  %v3715_v31 = vld [vmem:[#allocation2 + $0x48] sm:$0xff]  ;;  %v936_v47 = vsel %vm452_vm2, %v3732_v43, -inf }
 0x3a3   :  { %v593_v33 = vpop.f32.mrf.mxu0  ;;  %v957_v35 = vsel %vm452_vm2, %v3715_v31, -inf  ;;  %v3723_v39 = vld [vmem:[#allocation2 + $0x28] sm:$0xff] }
 0x3a4   :  { %607 = vst.msk [vmem:[#allocation2 + $0x58] sm:$0xff] %vm452_vm2, %v599_v25  ;;  %v594_v38 = vadd.f32 %v593_v33, %v3688_v9  ;;  %931 = vmax.xlane.f32.xlu0 %v930_v37  ;;  %v945_v41 = vsel %vm452_vm2, %v3723_v39, -inf  ;;  %v3743_v54 = vld [vmem:[#allocation2 + $0x40] sm:$0xff] }
 0x3a5   :  { %958 = vmax.xlane.f32.xlu1 %v957_v35  ;;  %v954_v1 = vsel %vm452_vm2, %v3743_v54, -inf  ;;  %v3754_v5 = vld [vmem:[#allocation2 + $0x20] sm:$0xff] }
 0x3a6   :  { %606 = vst.msk [vmem:[#allocation2 + $0x50] sm:$0xff] %vm452_vm2, %v594_v38 }
 0x3a8   :  { %949 = vmax.xlane.f32.xlu0 %v948_v42 }
 0x3a9   :  { %946 = vmax.xlane.f32.xlu1 %v945_v41  ;;  %v2832_v44 = vpop.f32.mrf.mxu1 }
 0x3aa   :  { %v728_v45 = vadd.f32 %v2832_v44, %v3653_v53 }
 0x3ab   :  { %v722_v46 = vpop.f32.mrf.mxu1  ;;  %v3737_v48 = vld [vmem:[#allocation2 + $0x58] sm:$0xff] }
 0x3ac   :  { %752 = vst.msk [vmem:[#allocation2 + $0x68] sm:$0xff] %vm452_vm2, %v728_v45  ;;  %v723_v50 = vadd.f32 %v722_v46, %v3658_v55  ;;  %937 = vmax.xlane.f32.xlu0 %v936_v47  ;;  %v963_v51 = vsel %vm452_vm2, %v3737_v48, -inf }
 0x3ad   :  { %v2835_v56 = vpop.f32.mrf.mxu1  ;;  %v2853_v57 = vpop.f32.mrf.mxu0  ;;  %964 = vmax.xlane.f32.xlu1 %v963_v51 }
 0x3ae   :  { %751 = vst.msk [vmem:[#allocation2 + $0x60] sm:$0xff] %vm452_vm2, %v723_v50  ;;  %v738_v59 = vadd.f32 %v2835_v56, %v3664_v58  ;;  %v877_v61 = vadd.f32 %v2853_v57, %v3653_v53 }
 0x3af   :  { %v732_v62 = vpop.f32.mrf.mxu1  ;;  %v871_v0 = vpop.f32.mrf.mxu0 }
 0x3b0   :  { %754 = vst.msk [vmem:[#allocation2 + $0x78] sm:$0xff] %vm452_vm2, %v738_v59  ;;  %901 = vst.msk [vmem:[#allocation2 + $0x98] sm:$0xff] %vm452_vm2, %v877_v61  ;;  %v733_v2 = vadd.f32 %v732_v62, %v3671_v63  ;;  %v872_v3 = vadd.f32 %v871_v0, %v3658_v55  ;;  %955 = vmax.xlane.f32.xlu0 %v954_v1  ;;  %v942_v55 = vsel %vm452_vm2, %v3754_v5, -inf }
 0x3b1   :  { %v2838_v6 = vpop.f32.mrf.mxu1  ;;  %v2856_v7 = vpop.f32.mrf.mxu0 }
 0x3b2   :  { %753 = vst.msk [vmem:[#allocation2 + $0x70] sm:$0xff] %vm452_vm2, %v733_v2  ;;  %900 = vst.msk [vmem:[#allocation2 + $0x90] sm:$0xff] %vm452_vm2, %v872_v3  ;;  %v748_v53 = vadd.f32 %v2838_v6, %v3679_v4  ;;  %v887_v8 = vadd.f32 %v2856_v7, %v3664_v58  ;;  %v3770_v58 = vld [vmem:[#allocation2 + $0x50] sm:$0xff]  ;;  %v3828_v2 = vpop.permute.xlu1 %1595  ;;  %v3830_v3 = vpop.permute.xlu0 %1464 }
 0x3b3   :  { %v742_v10 = vpop.f32.mrf.mxu1  ;;  %v881_v11 = vpop.f32.mrf.mxu0  ;;  %v3760_v13 = vld [vmem:[#allocation2 + $0x68] sm:$0xff] }
 0x3b4   :  { %756 = vst.msk [vmem:[#allocation2 + $0x88] sm:$0xff] %vm452_vm2, %v748_v53  ;;  %903 = vst.msk [vmem:[#allocation2 + $0xa8] sm:$0xff] %vm452_vm2, %v887_v8  ;;  %v743_v14 = vadd.f32 %v742_v10, %v3688_v9  ;;  %v882_v18 = vadd.f32 %v881_v11, %v3671_v63  ;;  %v969_v19 = vsel %vm452_vm2, %v3760_v13, -inf  ;;  %943 = vmax.xlane.f32.xlu0 %v942_v55  ;;  %v960_v63 = vsel %vm452_vm2, %v3770_v58, -inf }
 0x3b5   :  { %v2859_v20 = vpop.f32.mrf.mxu0  ;;  %970 = vmax.xlane.f32.xlu1 %v969_v19  ;;  %v3783_v35 = vld [vmem:[#allocation2 + $0x60] sm:$0xff] }
 0x3b6   :  { %755 = vst.msk [vmem:[#allocation2 + $0x80] sm:$0xff] %vm452_vm2, %v743_v14  ;;  %902 = vst.msk [vmem:[#allocation2 + $0xa0] sm:$0xff] %vm452_vm2, %v882_v18  ;;  %v897_v24 = vadd.f32 %v2859_v20, %v3679_v4  ;;  %v966_v4 = vsel %vm452_vm2, %v3783_v35, -inf  ;;  %v3832_v6 = vpop.permute.xlu1 %1593  ;;  %v3834_v7 = vpop.permute.xlu0 %1462 }
 0x3b7   :  { %v891_v17 = vpop.f32.mrf.mxu0  ;;  %v3775_v28 = vld [vmem:[#allocation2 + $0x98] sm:$0xff] }
 0x3b8   :  { %905 = vst.msk [vmem:[#allocation2 + $0xb8] sm:$0xff] %vm452_vm2, %v897_v24  ;;  %v892_v25 = vadd.f32 %v891_v17, %v3688_v9  ;;  %v987_v33 = vsel %vm452_vm2, %v3775_v28, -inf  ;;  %961 = vmax.xlane.f32.xlu0 %v960_v63  ;;  %v3785_v37 = vld [vmem:[#allocation2 + $0x78] sm:$0xff] }
 0x3b9   :  { %988 = vmax.xlane.f32.xlu1 %v987_v33  ;;  %v975_v38 = vsel %vm452_vm2, %v3785_v37, -inf  ;;  %v3792_v41 = vld [vmem:[#allocation2 + $0x90] sm:$0xff] }
 0x3ba   :  { %904 = vst.msk [vmem:[#allocation2 + $0xb0] sm:$0xff] %vm452_vm2, %v892_v25  ;;  %v984_v42 = vsel %vm452_vm2, %v3792_v41, -inf  ;;  %v3800_v45 = vld [vmem:[#allocation2 + $0x70] sm:$0xff]  ;;  %v3836_v53 = vpop.permute.xlu1 %1591  ;;  %v3838_v8 = vpop.permute.xlu0 %1460 }
 0x3bb   :  { %v3794_v9 = vld [vmem:[#allocation2 + $0xa8] sm:$0xff]  ;;  %v972_v47 = vsel %vm452_vm2, %v3800_v45, -inf }
 0x3bc   :  { %967 = vmax.xlane.f32.xlu0 %v966_v4  ;;  %v993_v44 = vsel %vm452_vm2, %v3794_v9, -inf  ;;  %v3802_v46 = vld [vmem:[#allocation2 + $0x88] sm:$0xff] }
 0x3bd   :  { %976 = vmax.xlane.f32.xlu1 %v975_v38  ;;  %v981_v50 = vsel %vm452_vm2, %v3802_v46, -inf  ;;  %v3808_v51 = vld [vmem:[#allocation2 + $0xa0] sm:$0xff] }
 0x3be   :  { %v990_v57 = vsel %vm452_vm2, %v3808_v51, -inf  ;;  %v3816_v61 = vld [vmem:[#allocation2 + $0x80] sm:$0xff] }
 0x3bf   :  { %v3810_v56 = vld [vmem:[#allocation2 + $0xb8] sm:$0xff]  ;;  %v978_v62 = vsel %vm452_vm2, %v3816_v61, -inf }
 0x3c0   :  { %985 = vmax.xlane.f32.xlu0 %v984_v42  ;;  %v999_v59 = vsel %vm452_vm2, %v3810_v56, -inf }
 0x3c1   :  { %994 = vmax.xlane.f32.xlu1 %v993_v44  ;;  %v3820_v0 = vld [vmem:[#allocation2 + $0xb0] sm:$0xff] }
 0x3c2   :  { %v996_v1 = vsel %vm452_vm2, %v3820_v0, -inf }
 0x3c4   :  { %973 = vmax.xlane.f32.xlu0 %v972_v47 }
 0x3c5   :  { %982 = vmax.xlane.f32.xlu1 %v981_v50 }
 0x3c8   :  { %991 = vmax.xlane.f32.xlu0 %v990_v57 }
 0x3c9   :  { %1000 = vmax.xlane.f32.xlu1 %v999_v59 }
 0x3cc   :  { %979 = vmax.xlane.f32.xlu0 %v978_v62 }
 0x3d0   :  { %997 = vmax.xlane.f32.xlu0 %v996_v1 }
 0x3da   :  { %1589 = vrot.lane.b32.xlu1 %v3444_v34, %s3284_s22 }
 0x3e6   :  { %1458 = vrot.lane.b32.xlu0 %v3444_v34, %s3283_s2 }
 0x425   :  { %v935_v10 = vpop.xlane.xlu1 %934 }
 0x426   :  { %v1003_v11 = vsub.f32 %v3694_v15, %v935_v10 }
 0x428   :  { %v1028_v55 = vmul.f32 1.442695, %v1003_v11 }
 0x429   :  { %v953_v14 = vpop.xlane.xlu0 %952 }
 0x42a   :  { %v941_v18 = vpop.xlane.xlu1 %940  ;;  %3053 = vpow2.f32 %v1028_v55  ;;  %v1009_v34 = vsub.f32 %v3704_v16, %v953_v14 }
 0x42b   :  { %v1005_v19 = vsub.f32 %v3706_v23, %v941_v18 }
 0x42c   :  { %v1040_v20 = vmul.f32 1.442695, %v1009_v34 }
 0x42d   :  { %v1032_v24 = vmul.f32 1.442695, %v1005_v19  ;;  %v932_v63 = vpop.xlane.xlu0 %931 }
 0x42e   :  { %v959_v17 = vpop.xlane.xlu1 %958  ;;  %3055 = vpow2.f32 %v1040_v20  ;;  %v1002_v33 = vsub.f32 %v3712_v26, %v932_v63 }
 0x42f   :  { %v1011_v25 = vsub.f32 %v3715_v31, %v959_v17  ;;  %3057 = vpow2.f32 %v1032_v24 }
 0x430   :  { %v1026_v15 = vmul.f32 1.442695, %v1002_v33 }
 0x431   :  { %v1044_v4 = vmul.f32 1.442695, %v1011_v25  ;;  %v950_v42 = vpop.xlane.xlu0 %949 }
 0x432   :  { %v947_v38 = vpop.xlane.xlu1 %946  ;;  %v1008_v16 = vsub.f32 %v3725_v40, %v950_v42  ;;  %3059 = vpow2.f32 %v1026_v15 }
 0x433   :  { %v1007_v44 = vsub.f32 %v3723_v39, %v947_v38  ;;  %3061 = vpow2.f32 %v1044_v4 }
 0x434   :  { %v1038_v47 = vmul.f32 1.442695, %v1008_v16 }
 0x435   :  { %v1036_v23 = vmul.f32 1.442695, %v1007_v44  ;;  %v938_v50 = vpop.xlane.xlu0 %937 }
 0x436   :  { %v1004_v57 = vsub.f32 %v3732_v43, %v938_v50  ;;  %v965_v59 = vpop.xlane.xlu1 %964  ;;  %3063 = vpow2.f32 %v1038_v47 }
 0x437   :  { %v3848_v31 = vpop.eup %3053  ;;  %v1013_v26 = vsub.f32 %v3737_v48, %v965_v59  ;;  %3065 = vpow2.f32 %v1036_v23 }
 0x438   :  { %v1030_v62 = vmul.f32 1.442695, %v1004_v57  ;;  %v1077_v39 = vsel %vm452_vm2, %v3848_v31, 0.0 }
 0x439   :  { %v1048_v1 = vmul.f32 1.442695, %v1013_v26  ;;  %1078 = vadd.xlane.f32.xlu1 %v1077_v39  ;;  %v956_v40 = vpop.xlane.xlu0 %955 }
 0x43a   :  { %3067 = vpow2.f32 %v1030_v62  ;;  %v1010_v10 = vsub.f32 %v3743_v54, %v956_v40 }
 0x43b   :  { %v3854_v11 = vpop.eup %3055  ;;  %3069 = vpow2.f32 %v1048_v1 }
 0x43c   :  { %v1042_v43 = vmul.f32 1.442695, %v1010_v10  ;;  %v1095_v55 = vsel %vm452_vm2, %v3854_v11, 0.0  ;;  %v3858_v14 = vpop.eup %3057 }
 0x43d   :  { %1096 = vadd.xlane.f32.xlu1 %v1095_v55  ;;  %v944_v48 = vpop.xlane.xlu0 %943  ;;  %v1083_v24 = vsel %vm452_vm2, %v3858_v14, 0.0 }
 0x43e   :  { %3071 = vpow2.f32 %v1042_v43  ;;  %v971_v18 = vpop.xlane.xlu1 %970  ;;  %v1006_v34 = vsub.f32 %v3754_v5, %v944_v48 }
 0x43f   :  { %v1015_v19 = vsub.f32 %v3760_v13, %v971_v18  ;;  %v3862_v20 = vpop.eup %3059 }
 0x440   :  { %v1034_v54 = vmul.f32 1.442695, %v1006_v34  ;;  %v3866_v17 = vpop.eup %3061  ;;  %v1074_v25 = vsel %vm452_vm2, %v3862_v20, 0.0 }
 0x441   :  { %v1052_v63 = vmul.f32 1.442695, %v1015_v19  ;;  %1084 = vadd.xlane.f32.xlu1 %v1083_v24  ;;  %v962_v33 = vpop.xlane.xlu0 %961  ;;  %1075 = vadd.xlane.f32.xlu0 %v1074_v25  ;;  %v1101_v42 = vsel %vm452_vm2, %v3866_v17, 0.0 }
 0x442   :  { %3073 = vpow2.f32 %v1034_v54  ;;  %v989_v4 = vpop.xlane.xlu1 %988  ;;  %v1012_v5 = vsub.f32 %v3770_v58, %v962_v33 }
 0x443   :  { %3075 = vpow2.f32 %v1052_v63  ;;  %v1021_v13 = vsub.f32 %v3775_v28, %v989_v4  ;;  %v3872_v15 = vpop.eup %3063 }
 0x444   :  { %v1046_v38 = vmul.f32 1.442695, %v1012_v5  ;;  %v3876_v44 = vpop.eup %3065  ;;  %v1092_v23 = vsel %vm452_vm2, %v3872_v15, 0.0 }
 0x445   :  { %v1064_v16 = vmul.f32 1.442695, %v1021_v13  ;;  %1102 = vadd.xlane.f32.xlu1 %v1101_v42  ;;  %v968_v47 = vpop.xlane.xlu0 %967  ;;  %1093 = vadd.xlane.f32.xlu0 %v1092_v23  ;;  %v1089_v26 = vsel %vm452_vm2, %v3876_v44, 0.0 }
 0x446   :  { %3077 = vpow2.f32 %v1046_v38  ;;  %v977_v50 = vpop.xlane.xlu1 %976  ;;  %v1014_v58 = vsub.f32 %v3783_v35, %v968_v47 }
 0x447   :  { %v3881_v28 = vpop.eup %3067  ;;  %3079 = vpow2.f32 %v1064_v16  ;;  %v1017_v57 = vsub.f32 %v3785_v37, %v977_v50 }
 0x448   :  { %v1050_v59 = vmul.f32 1.442695, %v1014_v58  ;;  %v1080_v62 = vsel %vm452_vm2, %v3881_v28, 0.0  ;;  %v3888_v39 = vpop.eup %3069 }
 0x449   :  { %v1056_v1 = vmul.f32 1.442695, %v1017_v57  ;;  %1090 = vadd.xlane.f32.xlu1 %v1089_v26  ;;  %v986_v40 = vpop.xlane.xlu0 %985  ;;  %1081 = vadd.xlane.f32.xlu0 %v1080_v62  ;;  %v1107_v48 = vsel %vm452_vm2, %v3888_v39, 0.0 }
 0x44a   :  { %3081 = vpow2.f32 %v1050_v59  ;;  %v995_v10 = vpop.xlane.xlu1 %994  ;;  %v1020_v35 = vsub.f32 %v3792_v41, %v986_v40 }
 0x44b   :  { %v3891_v43 = vpop.eup %3071  ;;  %3083 = vpow2.f32 %v1056_v1  ;;  %v1023_v37 = vsub.f32 %v3794_v9, %v995_v10 }
 0x44c   :  { %v1062_v55 = vmul.f32 1.442695, %v1020_v35  ;;  %v1098_v18 = vsel %vm452_vm2, %v3891_v43, 0.0 }
 0x44d   :  { %v1068_v34 = vmul.f32 1.442695, %v1023_v37  ;;  %1108 = vadd.xlane.f32.xlu1 %v1107_v48  ;;  %v974_v19 = vpop.xlane.xlu0 %973  ;;  %1099 = vadd.xlane.f32.xlu0 %v1098_v18 }
 0x44e   :  { %3085 = vpow2.f32 %v1062_v55  ;;  %v1016_v54 = vsub.f32 %v3800_v45, %v974_v19  ;;  %v983_v63 = vpop.xlane.xlu1 %982 }
 0x44f   :  { %v3899_v41 = vpop.eup %3073  ;;  %3087 = vpow2.f32 %v1068_v34  ;;  %v1019_v42 = vsub.f32 %v3802_v46, %v983_v63 }
 0x450   :  { %v3901_v24 = vpop.eup %3075  ;;  %v1086_v9 = vsel %vm452_vm2, %v3899_v41, 0.0  ;;  %v1054_v25 = vmul.f32 1.442695, %v1016_v54 }
 0x451   :  { %v1113_v33 = vsel %vm452_vm2, %v3901_v24, 0.0  ;;  %v992_v4 = vpop.xlane.xlu0 %991  ;;  %1087 = vadd.xlane.f32.xlu0 %v1086_v9  ;;  %v1060_v46 = vmul.f32 1.442695, %v1019_v42 }
 0x452   :  { %1114 = vadd.xlane.f32.xlu1 %v1113_v33  ;;  %v1022_v5 = vsub.f32 %v3808_v51, %v992_v4  ;;  %3089 = vpow2.f32 %v1054_v25  ;;  %v1001_v50 = vpop.xlane.xlu1 %1000 }
 0x453   :  { %v3908_v13 = vpop.eup %3077  ;;  %v1025_v62 = vsub.f32 %v3810_v56, %v1001_v50 }
 0x454   :  { %v3910_v45 = vpop.eup %3079  ;;  %v1104_v38 = vsel %vm452_vm2, %v3908_v13, 0.0  ;;  %v1066_v16 = vmul.f32 1.442695, %v1022_v5 }
 0x455   :  { %v1131_v23 = vsel %vm452_vm2, %v3910_v45, 0.0  ;;  %v980_v47 = vpop.xlane.xlu0 %979  ;;  %1105 = vadd.xlane.f32.xlu0 %v1104_v38  ;;  %v1072_v55 = vmul.f32 1.442695, %v1025_v62 }
 0x456   :  { %1132 = vadd.xlane.f32.xlu1 %v1131_v23  ;;  %v1018_v51 = vsub.f32 %v3816_v61, %v980_v47  ;;  %3091 = vpow2.f32 %v1066_v16  ;;  %v3964_v42 = vpop.permute.xlu1 %1589 }
 0x457   :  { %v3918_v58 = vpop.eup %3081 }
 0x458   :  { %v3920_v57 = vpop.eup %3083  ;;  %v1058_v59 = vmul.f32 1.442695, %v1018_v51  ;;  %v1110_v26 = vsel %vm452_vm2, %v3918_v58, 0.0 }
 0x459   :  { %v1119_v1 = vsel %vm452_vm2, %v3920_v57, 0.0  ;;  %v998_v40 = vpop.xlane.xlu0 %997  ;;  %1111 = vadd.xlane.f32.xlu0 %v1110_v26 }
 0x45a   :  { %3093 = vpow2.f32 %v1058_v59  ;;  %1120 = vadd.xlane.f32.xlu1 %v1119_v1  ;;  %v1024_v61 = vsub.f32 %v3820_v0, %v998_v40 }
 0x45b   :  { %v3928_v10 = vpop.eup %3085  ;;  %3095 = vpow2.f32 %v1060_v46 }
 0x45c   :  { %v1070_v35 = vmul.f32 1.442695, %v1024_v61  ;;  %v1128_v37 = vsel %vm452_vm2, %v3928_v10, 0.0  ;;  %v3932_v48 = vpop.eup %3087 }
 0x45d   :  { %1129 = vadd.xlane.f32.xlu0 %v1128_v37  ;;  %v1137_v56 = vsel %vm452_vm2, %v3932_v48, 0.0  ;;  %v1459_v47 = vpop.permute.xlu0 %1458 }
 0x45e   :  { %3097 = vpow2.f32 %v1070_v35 }
 0x45f   :  { %3099 = vpow2.f32 %v1072_v55  ;;  %v3936_v18 = vpop.eup %3089 }
 0x460   :  { %v1116_v0 = vsel %vm452_vm2, %v3936_v18, 0.0 }
 0x461   :  { %1138 = vadd.xlane.f32.xlu0 %v1137_v56 }
 0x463   :  { %v3940_v34 = vpop.eup %3091 }
 0x464   :  { %v1134_v63 = vsel %vm452_vm2, %v3940_v34, 0.0 }
 0x465   :  { %1117 = vadd.xlane.f32.xlu0 %v1116_v0 }
 0x467   :  { %v3942_v19 = vpop.eup %3093 }
 0x468   :  { %v1122_v54 = vsel %vm452_vm2, %v3942_v19, 0.0  ;;  %v3948_v9 = vpop.eup %3095 }
 0x469   :  { %1123 = vadd.xlane.f32.xlu1 %v1122_v54  ;;  %1135 = vadd.xlane.f32.xlu0 %v1134_v63  ;;  %v1125_v4 = vsel %vm452_vm2, %v3948_v9, 0.0 }
 0x46b   :  { %v3950_v25 = vpop.eup %3097 }
 0x46c   :  { %v1140_v33 = vsel %vm452_vm2, %v3950_v25, 0.0  ;;  %v3956_v5 = vpop.eup %3099 }
 0x46d   :  { %1141 = vadd.xlane.f32.xlu1 %v1140_v33  ;;  %1126 = vadd.xlane.f32.xlu0 %v1125_v4  ;;  %v1143_v38 = vsel %vm452_vm2, %v3956_v5, 0.0 }
 0x471   :  { %1144 = vadd.xlane.f32.xlu0 %v1143_v38 }
 0x47e   :  { %1587 = vrot.lane.b32.xlu1 %v3447_v36, %s3284_s22 }
 0x487   :  { %1456 = vrot.lane.b32.xlu0 %v3447_v36, %s3283_s2 }
 0x4c2   :  { %v1079_v16 = vpop.xlane.xlu1 %1078 }
 0x4c3   :  { %3101 = vrcp.f32 %v1079_v16 }
 0x4c6   :  { %v1097_v23 = vpop.xlane.xlu1 %1096 }
 0x4ca   :  { %v1085_v50 = vpop.xlane.xlu1 %1084  ;;  %v1076_v51 = vpop.xlane.xlu0 %1075 }
 0x4cb   :  { %3103 = vrcp.f32 %v1076_v51 }
 0x4cc   :  { %3105 = vrcp.f32 %v1097_v23 }
 0x4ce   :  { %v1094_v59 = vpop.xlane.xlu0 %1093  ;;  %v1103_v26 = vpop.xlane.xlu1 %1102 }
 0x4cf   :  { %3107 = vrcp.f32 %v1094_v59 }
 0x4d0   :  { %3109 = vrcp.f32 %v1085_v50  ;;  %v3102_v36 = vpop.eup %3101 }
 0x4d1   :  { %v1149_v35 = vmul.f32 %v3102_v36, %v3848_v31 }
 0x4d2   :  { %v1082_v46 = vpop.xlane.xlu0 %1081  ;;  %v1091_v62 = vpop.xlane.xlu1 %1090 }
 0x4d3   :  { %3111 = vrcp.f32 %v1082_v46 }
 0x4d4   :  { %3113 = vrcp.f32 %v1103_v26 }
 0x4d6   :  { %v1100_v1 = vpop.xlane.xlu0 %1099  ;;  %v1109_v56 = vpop.xlane.xlu1 %1108 }
 0x4d7   :  { %3115 = vrcp.f32 %v1100_v1 }
 0x4d8   :  { %v3104_v40 = vpop.eup %3103  ;;  %3117 = vrcp.f32 %v1091_v62 }
 0x4d9   :  { %v1147_v61 = vmul.f32 %v3104_v40, %v3862_v20  ;;  %v3106_v55 = vpop.eup %3105 }
 0x4da   :  { %v1088_v37 = vpop.xlane.xlu0 %1087  ;;  %v1161_v63 = vmul.f32 %v3106_v55, %v3854_v11 }
 0x4db   :  { %2872 = vmatprep.mubr.msk.f32.mxu1 %vm452_vm2, %v1147_v61  ;;  %3119 = vrcp.f32 %v1088_v37 }
 0x4dc   :  { %v3108_v0 = vpop.eup %3107  ;;  %2873 = vmatmul.mubr.msk.f32.vlgmr.msra.gmra.mxu1 %vm452_vm2, %v1149_v35  ;;  %3121 = vrcp.f32 %v1109_v56 }
 0x4dd   :  { %2903 = vmatpush3.msra.mxu1 %v3644_v49  ;;  %v1159_v54 = vmul.f32 %v3108_v0, %v3872_v15  ;;  %v3110_v31 = vpop.eup %3109  ;;  %v1115_v49 = vpop.xlane.xlu1 %1114 }
 0x4de   :  { %2904 = vmatprep.subr.mxu1 %v3830_v3  ;;  %v1106_v20 = vpop.xlane.xlu0 %1105  ;;  %v1153_v4 = vmul.f32 %v3110_v31, %v3858_v14 }
 0x4df   :  { %2905 = vmatpush3.msra.mxu1 %v3830_v3  ;;  %2893 = vmatprep.mubr.msk.f32.mxu0 %vm452_vm2, %v1159_v54  ;;  %3123 = vrcp.f32 %v1106_v20 }
 0x4e0   :  { %v3112_v33 = vpop.eup %3111  ;;  %2906 = vmatprep.subr.mxu1 %v3834_v7  ;;  %2894 = vmatmul.mubr.msk.f32.vlgmr.msra.gmra.mxu0 %vm452_vm2, %v1161_v63 }
 0x4e1   :  { %2907 = vmatpush3.msra.mxu1 %v3834_v7  ;;  %2924 = vmatpush3.msra.mxu0 %v3647_v52  ;;  %v1151_v11 = vmul.f32 %v3112_v33, %v3881_v28  ;;  %v3114_v15 = vpop.eup %3113 }
 0x4e2   :  { %2908 = vmatprep.subr.mxu1 %v3838_v8  ;;  %2925 = vmatprep.subr.mxu0 %v3828_v2  ;;  %v1112_v3 = vpop.xlane.xlu0 %1111 }
 0x4e3   :  { %2909 = vmatpush3.msra.mxu1 %v3838_v8  ;;  %2926 = vmatpush3.msra.mxu0 %v3828_v2  ;;  %3125 = vrcp.f32 %v1112_v3  ;;  %v1133_v8 = vpop.xlane.xlu1 %1132  ;;  %v1165_v2 = vmul.f32 %v3114_v15, %v3866_v17 }
 0x4e4   :  { %v3116_v38 = vpop.eup %3115  ;;  %2875 = vmatprep.mubr.msk.f32.mxu1 %vm452_vm2, %v1151_v11  ;;  %2910 = vmatprep.subr.mxu1 %v1459_v47 }
 0x4e5   :  { %2927 = vmatprep.subr.mxu0 %v3832_v6  ;;  %2876 = vmatmul.mubr.msk.f32.gmra.mxu1 %vm452_vm2, %v1153_v4  ;;  %v1163_v52 = vmul.f32 %v3116_v38, %v3891_v43  ;;  %v3118_v14 = vpop.eup %3117 }
 0x4e6   :  { %2911 = vmatpush3.msra.mxu1 %v1459_v47  ;;  %2928 = vmatpush3.msra.mxu0 %v3832_v6  ;;  %v1130_v7 = vpop.xlane.xlu0 %1129  ;;  %v1157_v16 = vmul.f32 %v3118_v14, %v3876_v44  ;;  %v53_v14 = vld [vmem:[#allocation7 + $0x8] sm:$0xff] }
 0x4e7   :  { %2929 = vmatprep.subr.mxu0 %v3836_v53  ;;  %3127 = vrcp.f32 %v1130_v7  ;;  %2896 = vmatprep.mubr.msk.f32.mxu0 %vm452_vm2, %v1163_v52  ;;  %v1121_v47 = vpop.xlane.xlu1 %1120  ;;  %v61_v52 = vld [vmem:[#allocation7 + $0x48] sm:$0xff] }
 0x4e8   :  { %2930 = vmatpush3.msra.mxu0 %v3836_v53  ;;  %v3120_v28 = vpop.eup %3119  ;;  %3129 = vrcp.f32 %v1133_v8  ;;  %v57_v8 = vld [vmem:[#allocation7 + $0x28] sm:$0xff] }
 0x4e9   :  { %2931 = vmatprep.subr.mxu0 %v3964_v42  ;;  %2897 = vmatmul.mubr.msk.f32.gmra.mxu0 %vm452_vm2, %v1165_v2  ;;  %v1155_v43 = vmul.f32 %v3120_v28, %v3899_v41  ;;  %v3122_v23 = vpop.eup %3121  ;;  %3131 = vrcp.f32 %v1115_v49 }
 0x4ea   :  { %2932 = vmatpush3.msra.mxu0 %v3964_v42  ;;  %v1139_v6 = vpop.xlane.xlu0 %1138  ;;  %v1169_v51 = vmul.f32 %v3122_v23, %v3888_v39 }
 0x4eb   :  { %2878 = vmatprep.mubr.msk.f32.mxu1 %vm452_vm2, %v1155_v43 }
 0x4ec   :  { %v3124_v17 = vpop.eup %3123  ;;  %2879 = vmatmul.mubr.msk.f32.gmra.mxu1 %vm452_vm2, %v1157_v16 }
 0x4ed   :  { %v1167_v50 = vmul.f32 %v3124_v17, %v3908_v13 }
 0x4ee   :  { %v1118_v53 = vpop.xlane.xlu0 %1117 }
 0x4ef   :  { %3133 = vrcp.f32 %v1118_v53  ;;  %2899 = vmatprep.mubr.msk.f32.mxu0 %vm452_vm2, %v1167_v50 }
 0x4f0   :  { %v3126_v42 = vpop.eup %3125  ;;  %3135 = vrcp.f32 %v1121_v47  ;;  %2900 = vmatmul.mubr.msk.f32.gmra.mxu0 %vm452_vm2, %v1169_v51 }
 0x4f1   :  { %3137 = vrcp.f32 %v1139_v6  ;;  %v1171_v59 = vmul.f32 %v3126_v42, %v3918_v58 }
 0x4f2   :  { %v1124_v44 = vpop.xlane.xlu1 %1123  ;;  %v1136_v41 = vpop.xlane.xlu0 %1135 }
 0x4f3   :  { %3139 = vrcp.f32 %v1136_v41  ;;  %2914 = vmatprep.mubr.msk.f32.mxu1 %vm452_vm2, %v1171_v59 }
 0x4f4   :  { %v3128_v26 = vpop.eup %3127  ;;  %3141 = vrcp.f32 %v1124_v44 }
 0x4f5   :  { %v1183_v39 = vmul.f32 %v3128_v26, %v3928_v10  ;;  %v3130_v62 = vpop.eup %3129 }
 0x4f6   :  { %v1142_v13 = vpop.xlane.xlu1 %1141  ;;  %v1127_v46 = vpop.xlane.xlu0 %1126  ;;  %v1185_v36 = vmul.f32 %v3130_v62, %v3910_v45 }
 0x4f7   :  { %3143 = vrcp.f32 %v1142_v13  ;;  %2935 = vmatprep.mubr.msk.f32.mxu0 %vm452_vm2, %v1183_v39  ;;  %v3132_v58 = vpop.eup %3131 }
 0x4f8   :  { %3145 = vrcp.f32 %v1127_v46  ;;  %v1173_v55 = vmul.f32 %v3132_v58, %v3901_v24 }
 0x4fa   :  { %v1588_v1 = vpop.permute.xlu1 %1587  ;;  %v1145_v40 = vpop.xlane.xlu0 %1144 }
 0x4fb   :  { %2933 = vmatprep.subr.mxu0 %v1588_v1  ;;  %3147 = vrcp.f32 %v1145_v40 }
 0x4fc   :  { %2934 = vmatpush3.msra.mxu0 %v1588_v1  ;;  %v3134_v61 = vpop.eup %3133 }
 0x4fd   :  { %2936 = vmatmul.mubr.msk.f32.vlgmr.msra.gmra.mxu0 %vm452_vm2, %v1185_v36  ;;  %v3136_v35 = vpop.eup %3135  ;;  %v1175_v0 = vmul.f32 %v3134_v61, %v3936_v18 }
 0x4fe   :  { %v1457_v37 = vpop.permute.xlu0 %1456  ;;  %v3138_v10 = vpop.eup %3137  ;;  %v1177_v31 = vmul.f32 %v3136_v35, %v3920_v57 }
 0x4ff   :  { %2912 = vmatprep.subr.mxu1 %v1457_v37  ;;  %v1189_v63 = vmul.f32 %v3138_v10, %v3932_v48 }
 0x500   :  { %v3140_v56 = vpop.eup %3139  ;;  %2913 = vmatpush3.msra.mxu1 %v1457_v37 }
 0x501   :  { %v3142_v54 = vpop.eup %3141  ;;  %2915 = vmatmul.mubr.msk.f32.vlgmr.msra.gmra.mxu1 %vm452_vm2, %v1173_v55  ;;  %v1187_v45 = vmul.f32 %v3140_v56, %v3940_v34 }
 0x502   :  { %2917 = vmatprep.mubr.msk.f32.mxu1 %vm452_vm2, %v1175_v0  ;;  %v1179_v33 = vmul.f32 %v3142_v54, %v3942_v19 }
 0x503   :  { %2938 = vmatprep.mubr.msk.f32.mxu0 %vm452_vm2, %v1187_v45 }
 0x504   :  { %v3144_v20 = vpop.eup %3143  ;;  %2939 = vmatmul.mubr.msk.f32.gmra.mxu0 %vm452_vm2, %v1189_v63 }
 0x505   :  { %v3146_v24 = vpop.eup %3145  ;;  %v1191_v18 = vmul.f32 %v3144_v20, %v3950_v25  ;;  %2918 = vmatmul.mubr.msk.f32.gmra.mxu1 %vm452_vm2, %v1177_v31 }
 0x506   :  { %2920 = vmatprep.mubr.msk.f32.mxu1 %vm452_vm2, %v1179_v33  ;;  %v1181_v48 = vmul.f32 %v3146_v24, %v3948_v9 }
 0x507   :  { %2941 = vmatprep.mubr.msk.f32.mxu0 %vm452_vm2, %v1191_v18 }
 0x508   :  { %v3148_v34 = vpop.eup %3147 }
 0x509   :  { %2921 = vmatmul.mubr.msk.f32.gmra.mxu1 %vm452_vm2, %v1181_v48  ;;  %v1193_v57 = vmul.f32 %v3148_v34, %v3956_v5  ;;  %v65_v5 = vld [vmem:[#allocation7 + $0x68] sm:$0xff] }
 0x50a   :  { %2944 = vmatprep.subr.mxu1 %v65_v5 }
 0x50b   :  { %2942 = vmatmul.mubr.msk.f32.gmra.mxu0 %vm452_vm2, %v1193_v57  ;;  %2945 = vmatpush3.msra.mxu1 %v65_v5 }
 0x50c   :  { %2946 = vmatprep.subr.mxu1 %v61_v52 }
 0x50d   :  { %2947 = vmatpush3.msra.mxu1 %v61_v52 }
 0x50e   :  { %2948 = vmatprep.subr.mxu1 %v57_v8 }
 0x50f   :  { %2949 = vmatpush3.msra.mxu1 %v57_v8 }
 0x510   :  { %2950 = vmatprep.subr.mxu1 %v53_v14 }
 0x511   :  { %2951 = vmatpush3.msra.mxu1 %v53_v14 }
 0x59c   :  { %v2874_v3 = vpop.f32.mrf.mxu1 }
 0x59e   :  { %v1296_v9 = vpop.f32.mrf.mxu1 }
 0x5a0   :  { %v2895_v49 = vpop.f32.mrf.mxu0 }
 0x5a1   :  { %1726 = vrot.lane.b32.xlu1 %v2895_v49, %s3285_s4 }
 0x5a2   :  { %v1427_v19 = vpop.f32.mrf.mxu0 }
 0x5a3   :  { %1724 = vrot.lane.b32.xlu0 %v1427_v19, %s3285_s4 }
 0x5a5   :  { %v4030_v38 = vpop.f32.mrf.mxu1 }
 0x5a7   :  { %v1306_v7 = vpop.f32.mrf.mxu1 }
 0x5a9   :  { %v2898_v25 = vpop.f32.mrf.mxu0 }
 0x5aa   :  { %1730 = vrot.lane.b32.xlu1 %v2898_v25, %s3285_s4 }
 0x5ab   :  { %v1437_v11 = vpop.f32.mrf.mxu0 }
 0x5ac   :  { %1728 = vrot.lane.b32.xlu0 %v1437_v11, %s3285_s4  ;;  %v4032_v2 = vpop.f32.mrf.mxu1 }
 0x5ae   :  { %v4034_v28 = vpop.f32.mrf.mxu1 }
 0x5b0   :  { %v2901_v15 = vpop.f32.mrf.mxu0 }
 0x5b1   :  { %1734 = vrot.lane.b32.xlu1 %v2901_v15, %s3285_s4 }
 0x5b2   :  { %v1447_v4 = vpop.f32.mrf.mxu0 }
 0x5b3   :  { %1732 = vrot.lane.b32.xlu0 %v1447_v4, %s3285_s4 }
 0x5bd   :  { %v2937_v43 = vpop.f32.mrf.mxu0 }
 0x5bf   :  { %v1689_v23 = vpop.f32.mrf.mxu0 }
 0x5c1   :  { %v2916_v6 = vpop.f32.mrf.mxu1 }
 0x5c2   :  { %1750 = vrot.lane.b32.xlu1 %v2916_v6, %s3286_s12 }
 0x5c3   :  { %v1558_v16 = vpop.f32.mrf.mxu1 }
 0x5c4   :  { %1748 = vrot.lane.b32.xlu0 %v1558_v16, %s3286_s12  ;;  %v2940_v47 = vpop.f32.mrf.mxu0 }
 0x5c5   :  { %v2919_v17 = vpop.f32.mrf.mxu1 }
 0x5c6   :  { %1774 = vrot.lane.b32.xlu1 %v2937_v43, %s3287_s3  ;;  %v1699_v50 = vpop.f32.mrf.mxu0 }
 0x5c7   :  { %v1568_v53 = vpop.f32.mrf.mxu1 }
 0x5c8   :  { %1772 = vrot.lane.b32.xlu0 %v1689_v23, %s3287_s3 }
 0x5c9   :  { %v2922_v51 = vpop.f32.mrf.mxu1 }
 0x5ca   :  { %1754 = vrot.lane.b32.xlu1 %v2919_v17, %s3286_s12 }
 0x5cb   :  { %v1578_v42 = vpop.f32.mrf.mxu1  ;;  %v2943_v44 = vpop.f32.mrf.mxu0 }
 0x5cc   :  { %1752 = vrot.lane.b32.xlu0 %v1568_v53, %s3286_s12 }
 0x5cd   :  { %v1709_v41 = vpop.f32.mrf.mxu0 }
 0x5ce   :  { %1778 = vrot.lane.b32.xlu1 %v2940_v47, %s3287_s3 }
 0x5d0   :  { %1776 = vrot.lane.b32.xlu0 %v1699_v50, %s3287_s3 }
 0x5d2   :  { %1758 = vrot.lane.b32.xlu1 %v2922_v51, %s3286_s12 }
 0x5d4   :  { %1756 = vrot.lane.b32.xlu0 %v1578_v42, %s3286_s12 }
 0x5d6   :  { %1782 = vrot.lane.b32.xlu1 %v2943_v44, %s3287_s3 }
 0x5d8   :  { %1780 = vrot.lane.b32.xlu0 %v1709_v41, %s3287_s3 }
 0x5dc   :  { %1811 = vrot.lane.b32.xlu0 %v3441_v32, %s3273_s21 }
 0x613   :  { %v1727_v59 = vpop.permute.xlu1 %1726 }
 0x614   :  { %v1791_v61 = vsel %vm326_vm1, %v2874_v3, %v1727_v59 }
 0x615   :  { %v1725_v26 = vpop.permute.xlu0 %1724 }
 0x616   :  { %v1790_v58 = vsel %vm326_vm1, %v1296_v9, %v1725_v26 }
 0x61c   :  { %v1731_v13 = vpop.permute.xlu1 %1730 }
 0x61d   :  { %v1793_v63 = vsel %vm326_vm1, %v4030_v38, %v1731_v13 }
 0x61e   :  { %v1729_v39 = vpop.permute.xlu0 %1728 }
 0x61f   :  { %v1792_v45 = vsel %vm326_vm1, %v1306_v7, %v1729_v39 }
 0x623   :  { %v1735_v46 = vpop.permute.xlu1 %1734 }
 0x624   :  { %v1795_v19 = vsel %vm326_vm1, %v4032_v2, %v1735_v46 }
 0x625   :  { %v1733_v62 = vpop.permute.xlu0 %1732 }
 0x626   :  { %v1794_v57 = vsel %vm326_vm1, %v4034_v28, %v1733_v62 }
 0x634   :  { %v1751_v1 = vpop.permute.xlu1 %1750 }
 0x635   :  { %v1798_v32 = vsel %vm1796_vm3, %v1791_v61, %v1751_v1 }
 0x636   :  { %v1749_v36 = vpop.permute.xlu0 %1748 }
 0x637   :  { %v1797_v35 = vsel %vm1796_vm3, %v1790_v58, %v1749_v36 }
 0x638   :  { %v1775_v40 = vpop.permute.xlu1 %1774 }
 0x639   :  { %v1805_v55 = vsel %vm1803_vm4, %v1798_v32, %v1775_v40 }
 0x63a   :  { %v1773_v37 = vpop.permute.xlu0 %1772 }
 0x63b   :  { %v1804_v10 = vsel %vm1803_vm4, %v1797_v35, %v1773_v37 }
 0x63c   :  { %v1755_v56 = vpop.permute.xlu1 %1754  ;;  %2952 = vmatprep.mubr.msk.f32.mxu1 %vm85_vm0, %v1804_v10 }
 0x63d   :  { %2953 = vmatmul.mubr.msk.f32.vlgmr.msra.gmra.mxu1 %vm85_vm0, %v1805_v55  ;;  %v1800_v24 = vsel %vm1796_vm3, %v1793_v63, %v1755_v56 }
 0x63e   :  { %v1753_v0 = vpop.permute.xlu0 %1752 }
 0x63f   :  { %v1799_v20 = vsel %vm1796_vm3, %v1792_v45, %v1753_v0 }
 0x640   :  { %v1779_v54 = vpop.permute.xlu1 %1778 }
 0x641   :  { %v1807_v18 = vsel %vm1803_vm4, %v1800_v24, %v1779_v54 }
 0x642   :  { %v1777_v31 = vpop.permute.xlu0 %1776 }
 0x643   :  { %v1806_v33 = vsel %vm1803_vm4, %v1799_v20, %v1777_v31 }
 0x644   :  { %v1759_v48 = vpop.permute.xlu1 %1758  ;;  %2955 = vmatprep.mubr.msk.f32.mxu1 %vm85_vm0, %v1806_v33 }
 0x645   :  { %2956 = vmatmul.mubr.msk.f32.gmra.mxu1 %vm85_vm0, %v1807_v18  ;;  %v1802_v3 = vsel %vm1796_vm3, %v1795_v19, %v1759_v48  ;;  %v58_v19 = vld [vmem:[#allocation7 + $0x30] sm:$0xff] }
 0x646   :  { %v1757_v34 = vpop.permute.xlu0 %1756 }
 0x647   :  { %v1801_v25 = vsel %vm1796_vm3, %v1794_v57, %v1757_v34  ;;  %v66_v57 = vld [vmem:[#allocation7 + $0x70] sm:$0xff] }
 0x648   :  { %v1783_v49 = vpop.permute.xlu1 %1782  ;;  %2961 = vmatprep.subr.mxu0 %v66_v57 }
 0x649   :  { %v1809_v9 = vsel %vm1803_vm4, %v1802_v3, %v1783_v49  ;;  %2962 = vmatpush3.msra.mxu0 %v66_v57  ;;  %v62_v49 = vld [vmem:[#allocation7 + $0x50] sm:$0xff]  ;;  %v4111_v3 = vld [vmem:[%s4226_s7] sm:$0xff] }
 0x64a   :  { %v1781_v11 = vpop.permute.xlu0 %1780  ;;  %2963 = vmatprep.subr.mxu0 %v62_v49 }
 0x64b   :  { %v1808_v15 = vsel %vm1803_vm4, %v1801_v25, %v1781_v11  ;;  %2964 = vmatpush3.msra.mxu0 %v62_v49  ;;  %v54_v25 = vld [vmem:[#allocation7 + $0x10] sm:$0xff]  ;;  %v2033_v11 = vsub.s32 1, %v3403_v60 }
 0x64c   :  { %2958 = vmatprep.mubr.msk.f32.mxu1 %vm85_vm0, %v1808_v15  ;;  %2965 = vmatprep.subr.mxu0 %v58_v19 }
 0x64d   :  { %2959 = vmatmul.mubr.msk.f32.gmra.mxu1 %vm85_vm0, %v1809_v9  ;;  %2966 = vmatpush3.msra.mxu0 %v58_v19  ;;  %v4114_v15 = vrot.slane %v4111_v3, %v2033_v11 }
 0x64e   :  { %v1812_v4 = vpop.permute.xlu0 %1811  ;;  %2967 = vmatprep.subr.mxu0 %v54_v25 }
 0x64f   :  { %2968 = vmatpush3.msra.mxu0 %v54_v25 }
 0x6fd   :  { %v2954_v38 = vpop.f32.mrf.mxu1 }
 0x6fe   :  { %v1904_v5 = vadd.f32 %v2954_v38, %v1812_v4 }
 0x6ff   :  { %v1898_v52 = vpop.f32.mrf.mxu1 }
 0x700   :  { %v1899_v7 = vadd.f32 %v1898_v52, %v1812_v4  ;;  %v1928_v8 = vadd.f32 %v1904_v5, %v3417_v21 }
 0x702   :  { %v1927_v2 = vadd.f32 %v1899_v7, %v3411_v12  ;;  %v1936_v14 = vsel %vm85_vm0, %v1928_v8, 0.0 }
 0x703   :  { %1937 = vadd.xlane.f32.xlu0 %v1936_v14 }
 0x704   :  { %v1933_v28 = vsel %vm85_vm0, %v1927_v2, 0.0 }
 0x705   :  { %v2957_v6 = vpop.f32.mrf.mxu1  ;;  %1934 = vadd.xlane.f32.xlu1 %v1933_v28  ;;  %v2013_v28 = vsub.s32 4, %v3403_v60 }
 0x706   :  { %v1914_v16 = vadd.f32 %v2957_v6, %v1812_v4 }
 0x707   :  { %v1908_v43 = vpop.f32.mrf.mxu1 }
 0x708   :  { %v1909_v23 = vadd.f32 %v1908_v43, %v1812_v4  ;;  %v1930_v47 = vadd.f32 %v1914_v16, %v3427_v27 }
 0x70a   :  { %v1929_v17 = vadd.f32 %v1909_v23, %v3420_v22  ;;  %v1942_v44 = vsel %vm85_vm0, %v1930_v47, 0.0 }
 0x70c   :  { %v1939_v53 = vsel %vm85_vm0, %v1929_v17, 0.0 }
 0x70d   :  { %v2960_v50 = vpop.f32.mrf.mxu1  ;;  %1940 = vadd.xlane.f32.xlu0 %v1939_v53 }
 0x70e   :  { %v1924_v21 = vadd.f32 %v2960_v50, %v1812_v4  ;;  %v2023_v50 = vsub.s32 5, %v3403_v60 }
 0x70f   :  { %v1918_v12 = vpop.f32.mrf.mxu1 }
 0x710   :  { %v1932_v51 = vadd.f32 %v1924_v21, %v3436_v30  ;;  %v1919_v42 = vadd.f32 %v1918_v12, %v1812_v4 }
 0x711   :  { %1943 = vadd.xlane.f32.xlu0 %v1942_v44 }
 0x712   :  { %v1931_v41 = vadd.f32 %v1919_v42, %v3430_v29  ;;  %v1948_v59 = vsel %vm85_vm0, %v1932_v51, 0.0 }
 0x714   :  { %v1945_v22 = vsel %vm85_vm0, %v1931_v41, 0.0 }
 0x715   :  { %1949 = vadd.xlane.f32.xlu0 %v1948_v59  ;;  %1946 = vadd.xlane.f32.xlu1 %v1945_v22 }
 0x78c   :  { %v1938_v27 = vpop.xlane.xlu0 %1937 }
 0x78d   :  { %v1952_v26 = vmul.f32 0.03125, %v1938_v27  ;;  %v2024_v27 = vrot.slane %v4111_v3, %v2023_v50 }
 0x78e   :  { %v1935_v13 = vpop.xlane.xlu1 %1934 }
 0x78f   :  { %v4077_v39 = vsub.f32 %v1928_v8, %v1952_v26  ;;  %v1951_v46 = vmul.f32 0.03125, %v1935_v13 }
 0x791   :  { %v4079_v62 = vsub.f32 %v1927_v2, %v1951_v46  ;;  %v1964_v30 = vmul.f32 %v4077_v39, %v4077_v39 }
 0x793   :  { %v1972_v1 = vsel %vm85_vm0, %v1964_v30, 0.0  ;;  %v1963_v29 = vmul.f32 %v4079_v62, %v4079_v62 }
 0x794   :  { %1973 = vadd.xlane.f32.xlu0 %v1972_v1 }
 0x795   :  { %v1969_v36 = vsel %vm85_vm0, %v1963_v29, 0.0 }
 0x796   :  { %v1941_v40 = vpop.xlane.xlu0 %1940  ;;  %1970 = vadd.xlane.f32.xlu1 %v1969_v36 }
 0x797   :  { %v1953_v58 = vmul.f32 0.03125, %v1941_v40 }
 0x799   :  { %v4087_v61 = vsub.f32 %v1929_v17, %v1953_v58  ;;  %v2014_v17 = vrot.slane %v4111_v3, %v2013_v28 }
 0x79a   :  { %v1944_v35 = vpop.xlane.xlu0 %1943 }
 0x79b   :  { %v1954_v37 = vmul.f32 0.03125, %v1944_v35  ;;  %v1965_v32 = vmul.f32 %v4087_v61, %v4087_v61 }
 0x79d   :  { %v4091_v10 = vsub.f32 %v1930_v47, %v1954_v37  ;;  %v1975_v55 = vsel %vm85_vm0, %v1965_v32, 0.0 }
 0x79e   :  { %v1950_v56 = vpop.xlane.xlu0 %1949  ;;  %1976 = vadd.xlane.f32.xlu1 %v1975_v55  ;;  %v1947_v0 = vpop.xlane.xlu1 %1946 }
 0x79f   :  { %v1956_v54 = vmul.f32 0.03125, %v1950_v56  ;;  %v1955_v45 = vmul.f32 0.03125, %v1947_v0  ;;  %v1966_v63 = vmul.f32 %v4091_v10, %v4091_v10 }
 0x7a1   :  { %v4096_v20 = vsub.f32 %v1932_v51, %v1956_v54  ;;  %v4098_v31 = vsub.f32 %v1931_v41, %v1955_v45  ;;  %v1978_v24 = vsel %vm85_vm0, %v1966_v63, 0.0  ;;  %v71_v54 = vld [vmem:[#allocation7 + $0xf8] sm:$0xff] }
 0x7a2   :  { %1979 = vadd.xlane.f32.xlu0 %v1978_v24  ;;  %2978 = vmatprep.subr.mxu1 %v71_v54  ;;  %v70_v45 = vld [vmem:[#allocation7 + $0xd8] sm:$0xff] }
 0x7a3   :  { %v1968_v33 = vmul.f32 %v4096_v20, %v4096_v20  ;;  %v1967_v18 = vmul.f32 %v4098_v31, %v4098_v31  ;;  %2979 = vmatpush3.msra.mxu1 %v71_v54  ;;  %v69_v63 = vld [vmem:[#allocation7 + $0xb8] sm:$0xff] }
 0x7a4   :  { %2980 = vmatprep.subr.mxu1 %v70_v45  ;;  %v63_v24 = vld [vmem:[#allocation7 + $0x58] sm:$0xff] }
 0x7a5   :  { %v1984_v48 = vsel %vm85_vm0, %v1968_v33, 0.0  ;;  %v1981_v34 = vsel %vm85_vm0, %v1967_v18, 0.0  ;;  %2981 = vmatpush3.msra.mxu1 %v70_v45  ;;  %v59_v33 = vld [vmem:[#allocation7 + $0x38] sm:$0xff] }
 0x7a6   :  { %1985 = vadd.xlane.f32.xlu0 %v1984_v48  ;;  %1982 = vadd.xlane.f32.xlu1 %v1981_v34  ;;  %v55_v18 = vld [vmem:[#allocation7 + $0x18] sm:$0xff] }
 0x7a7   :  { %2982 = vmatprep.subr.mxu1 %v69_v63 }
 0x7a8   :  { %2983 = vmatpush3.msra.mxu1 %v69_v63 }
 0x7b7   :  { %2203 = vrot.lane.b32.xlu1 %v4114_v15, %s3282_s20 }
 0x81d   :  { %v1974_v9 = vpop.xlane.xlu0 %1973 }
 0x81e   :  { %v1988_v4 = vmul.f32 0.03125, %v1974_v9 }
 0x81f   :  { %v1971_v38 = vpop.xlane.xlu1 %1970 }
 0x820   :  { %v1994_v5 = vadd.f32 1e-05, %v1988_v4  ;;  %v1987_v52 = vmul.f32 0.03125, %v1971_v38 }
 0x822   :  { %3149 = vrsqrt.f32 %v1994_v5  ;;  %v1993_v7 = vadd.f32 1e-05, %v1987_v52 }
 0x824   :  { %3151 = vrsqrt.f32 %v1993_v7 }
 0x827   :  { %v1977_v8 = vpop.xlane.xlu1 %1976 }
 0x828   :  { %v1989_v2 = vmul.f32 0.03125, %v1977_v8 }
 0x82a   :  { %v1995_v14 = vadd.f32 1e-05, %v1989_v2 }
 0x82b   :  { %v1980_v6 = vpop.xlane.xlu0 %1979 }
 0x82c   :  { %3153 = vrsqrt.f32 %v1995_v14  ;;  %v1990_v43 = vmul.f32 0.03125, %v1980_v6 }
 0x82e   :  { %v1996_v16 = vadd.f32 1e-05, %v1990_v43 }
 0x82f   :  { %v3150_v23 = vpop.eup %3149  ;;  %v1986_v47 = vpop.xlane.xlu0 %1985 }
 0x830   :  { %v1983_v53 = vpop.xlane.xlu1 %1982  ;;  %v2006_v21 = vmul.f32 %v3150_v23, %v4077_v39  ;;  %3155 = vrsqrt.f32 %v1996_v16  ;;  %v1992_v12 = vmul.f32 0.03125, %v1986_v47 }
 0x831   :  { %v1991_v51 = vmul.f32 0.03125, %v1983_v53  ;;  %v3152_v42 = vpop.eup %3151 }
 0x832   :  { %v1998_v44 = vadd.f32 1e-05, %v1992_v12  ;;  %v2005_v59 = vmul.f32 %v3152_v42, %v4079_v62  ;;  %v2016_v22 = vmul.f32 %v2014_v17, %v2006_v21 }
 0x833   :  { %v1997_v41 = vadd.f32 1e-05, %v1991_v51 }
 0x834   :  { %3157 = vrsqrt.f32 %v1998_v44  ;;  %v2015_v26 = vmul.f32 %v2014_v17, %v2005_v59  ;;  %v4126_v46 = vadd.f32 %v2024_v27, %v2016_v22 }
 0x835   :  { %3159 = vrsqrt.f32 %v1997_v41 }
 0x836   :  { %v4124_v13 = vadd.f32 %v2024_v27, %v2015_v26 }
 0x838   :  { %2969 = vmatprep.mubr.msk.f32.mxu0 %vm85_vm0, %v4124_v13 }
 0x839   :  { %v3154_v39 = vpop.eup %3153  ;;  %2970 = vmatmul.mubr.msk.f32.vlgmr.msra.gmra.mxu0 %vm85_vm0, %v4126_v46 }
 0x83a   :  { %v2007_v30 = vmul.f32 %v3154_v39, %v4087_v61 }
 0x83c   :  { %v2017_v62 = vmul.f32 %v2014_v17, %v2007_v30 }
 0x83d   :  { %v3156_v1 = vpop.eup %3155 }
 0x83e   :  { %v4133_v29 = vadd.f32 %v2024_v27, %v2017_v62  ;;  %v2008_v36 = vmul.f32 %v3156_v1, %v4091_v10 }
 0x840   :  { %2972 = vmatprep.mubr.msk.f32.mxu0 %vm85_vm0, %v4133_v29  ;;  %v2018_v40 = vmul.f32 %v2014_v17, %v2008_v36 }
 0x841   :  { %v3158_v58 = vpop.eup %3157 }
 0x842   :  { %v3160_v35 = vpop.eup %3159  ;;  %v4138_v37 = vadd.f32 %v2024_v27, %v2018_v40  ;;  %v2010_v32 = vmul.f32 %v3158_v58, %v4096_v20  ;;  %v68_v20 = vld [vmem:[#allocation7 + $0x98] sm:$0xff] }
 0x843   :  { %v2009_v55 = vmul.f32 %v3160_v35, %v4098_v31  ;;  %2984 = vmatprep.subr.mxu1 %v68_v20  ;;  %v67_v31 = vld [vmem:[#allocation7 + $0x78] sm:$0xff] }
 0x844   :  { %2973 = vmatmul.mubr.msk.f32.gmra.mxu0 %vm85_vm0, %v4138_v37  ;;  %v2020_v61 = vmul.f32 %v2014_v17, %v2010_v32  ;;  %2985 = vmatpush3.msra.mxu1 %v68_v20 }
 0x845   :  { %v2019_v56 = vmul.f32 %v2014_v17, %v2009_v55  ;;  %2986 = vmatprep.subr.mxu1 %v67_v31 }
 0x846   :  { %v4144_v0 = vadd.f32 %v2024_v27, %v2020_v61  ;;  %2987 = vmatpush3.msra.mxu1 %v67_v31 }
 0x847   :  { %v4146_v10 = vadd.f32 %v2024_v27, %v2019_v56  ;;  %2988 = vmatprep.subr.mxu1 %v63_v24 }
 0x848   :  { %2989 = vmatpush3.msra.mxu1 %v63_v24 }
 0x849   :  { %2975 = vmatprep.mubr.msk.f32.mxu0 %vm85_vm0, %v4146_v10  ;;  %2990 = vmatprep.subr.mxu1 %v59_v33 }
 0x84a   :  { %2976 = vmatmul.mubr.msk.f32.gmra.mxu0 %vm85_vm0, %v4144_v0  ;;  %2991 = vmatpush3.msra.mxu1 %v59_v33 }
 0x84b   :  { %2992 = vmatprep.subr.mxu1 %v55_v18 }
 0x84c   :  { %2993 = vmatpush3.msra.mxu1 %v55_v18 }
 0x8f9   :  { %v2971_v48 = vpop.f32.mrf.mxu0 }
 0x8fa   :  { %v2125_v34 = vadd.f32 %v2971_v48, %v4114_v15 }
 0x8fb   :  { %v2119_v57 = vpop.f32.mrf.mxu0 }
 0x8fc   :  { %v2149_v49 = vmul.f32 %v2125_v34, %v2125_v34  ;;  %v2120_v19 = vadd.f32 %v2119_v57, %v4114_v15 }
 0x8fe   :  { %v2155_v25 = vmul.f32 %v2149_v49, %v2125_v34  ;;  %v2148_v11 = vmul.f32 %v2120_v19, %v2120_v19 }
 0x900   :  { %v2161_v9 = vmul.f32 0.044715, %v2155_v25  ;;  %v2154_v4 = vmul.f32 %v2148_v11, %v2120_v19 }
 0x902   :  { %v2167_v38 = vadd.f32 %v2161_v9, %v2125_v34  ;;  %v2160_v5 = vmul.f32 0.044715, %v2154_v4 }
 0x904   :  { %v2173_v52 = vmul.f32 0.7978846, %v2167_v38  ;;  %v2166_v7 = vadd.f32 %v2160_v5, %v2120_v19  ;;  %v2974_v8 = vpop.f32.mrf.mxu0  ;;  %v2204_v5 = vpop.permute.xlu1 %2203 }
 0x905   :  { %v2135_v2 = vadd.f32 %v2974_v8, %v4114_v15 }
 0x906   :  { %3161 = vtanh.f32 %v2173_v52  ;;  %v2172_v14 = vmul.f32 0.7978846, %v2166_v7  ;;  %v2129_v28 = vpop.f32.mrf.mxu0 }
 0x907   :  { %v2151_v6 = vmul.f32 %v2135_v2, %v2135_v2  ;;  %v2130_v43 = vadd.f32 %v2129_v28, %v4114_v15 }
 0x908   :  { %3163 = vtanh.f32 %v2172_v14 }
 0x909   :  { %v2157_v16 = vmul.f32 %v2151_v6, %v2135_v2  ;;  %v2150_v23 = vmul.f32 %v2130_v43, %v2130_v43 }
 0x90a   :  { %v2977_v17 = vpop.f32.mrf.mxu0 }
 0x90b   :  { %v2163_v47 = vmul.f32 0.044715, %v2157_v16  ;;  %v2156_v53 = vmul.f32 %v2150_v23, %v2130_v43  ;;  %v2145_v50 = vadd.f32 %v2977_v17, %v4114_v15 }
 0x90c   :  { %v2139_v21 = vpop.f32.mrf.mxu0 }
 0x90d   :  { %v2169_v12 = vadd.f32 %v2163_v47, %v2135_v2  ;;  %v2162_v51 = vmul.f32 0.044715, %v2156_v53  ;;  %v2153_v42 = vmul.f32 %v2145_v50, %v2145_v50  ;;  %v2140_v44 = vadd.f32 %v2139_v21, %v4114_v15 }
 0x90f   :  { %v2175_v41 = vmul.f32 0.7978846, %v2169_v12  ;;  %v2168_v59 = vadd.f32 %v2162_v51, %v2130_v43  ;;  %v2159_v22 = vmul.f32 %v2153_v42, %v2145_v50  ;;  %v2152_v27 = vmul.f32 %v2140_v44, %v2140_v44 }
 0x911   :  { %3165 = vtanh.f32 %v2175_v41  ;;  %v2174_v26 = vmul.f32 0.7978846, %v2168_v59  ;;  %v2165_v39 = vmul.f32 0.044715, %v2159_v22  ;;  %v2158_v30 = vmul.f32 %v2152_v27, %v2140_v44 }
 0x913   :  { %v3162_v62 = vpop.eup %3161  ;;  %3167 = vtanh.f32 %v2174_v26  ;;  %v2171_v1 = vadd.f32 %v2165_v39, %v2145_v50  ;;  %v2164_v36 = vmul.f32 0.044715, %v2158_v30 }
 0x914   :  { %v2185_v40 = vadd.f32 1.0, %v3162_v62 }
 0x915   :  { %v3164_v58 = vpop.eup %3163  ;;  %v2177_v35 = vmul.f32 0.7978846, %v2171_v1  ;;  %v2170_v32 = vadd.f32 %v2164_v36, %v2140_v44 }
 0x916   :  { %v2184_v55 = vadd.f32 1.0, %v3164_v58  ;;  %v2191_v61 = vmul.f32 0.5, %v2185_v40 }
 0x917   :  { %3169 = vtanh.f32 %v2177_v35  ;;  %v2176_v15 = vmul.f32 0.7978846, %v2170_v32 }
 0x918   :  { %v2190_v56 = vmul.f32 0.5, %v2184_v55  ;;  %v2197_v45 = vmul.f32 %v2191_v61, %v2125_v34 }
 0x919   :  { %3171 = vtanh.f32 %v2176_v15 }
 0x91a   :  { %v2196_v54 = vmul.f32 %v2190_v56, %v2120_v19 }
 0x91c   :  { %2994 = vmatprep.mubr.msk.f32.mxu1 %vm2206_vm5, %v2196_v54 }
 0x91d   :  { %2995 = vmatmul.mubr.msk.f32.vlgmr.msra.gmra.mxu1 %vm2206_vm5, %v2197_v45 }
 0x91e   :  { %v3166_v63 = vpop.eup %3165 }
 0x91f   :  { %v2187_v20 = vadd.f32 1.0, %v3166_v63 }
 0x920   :  { %v3168_v31 = vpop.eup %3167 }
 0x921   :  { %v2186_v24 = vadd.f32 1.0, %v3168_v31  ;;  %v2193_v33 = vmul.f32 0.5, %v2187_v20 }
 0x923   :  { %v2192_v18 = vmul.f32 0.5, %v2186_v24  ;;  %v2199_v11 = vmul.f32 %v2193_v33, %v2135_v2 }
 0x924   :  { %v3170_v48 = vpop.eup %3169 }
 0x925   :  { %v2198_v57 = vmul.f32 %v2192_v18, %v2130_v43  ;;  %v2189_v49 = vadd.f32 1.0, %v3170_v48 }
 0x926   :  { %v3172_v25 = vpop.eup %3171 }
 0x927   :  { %2997 = vmatprep.mubr.msk.f32.mxu1 %vm2206_vm5, %v2198_v57  ;;  %v2188_v9 = vadd.f32 1.0, %v3172_v25  ;;  %v2195_v34 = vmul.f32 0.5, %v2189_v49  ;;  %v3288_v25 = vmov 0.0  }
 0x928   :  { %2998 = vmatmul.mubr.msk.f32.gmra.mxu1 %vm2206_vm5, %v2199_v11  ;;  %3003 = vmatprep.subr.mxu0 %v3288_v25 }
 0x929   :  { %v2194_v19 = vmul.f32 0.5, %v2188_v9  ;;  %v2201_v38 = vmul.f32 %v2195_v34, %v2145_v50  ;;  %3015 = vmatprep.mubr.msk.f32.mxu0 %vm3289_vm6, %v3288_v25 }
 0x92b   :  { %v2200_v4 = vmul.f32 %v2194_v19, %v2140_v44 }
 0x92d   :  { %3000 = vmatprep.mubr.msk.f32.mxu1 %vm2206_vm5, %v2200_v4 }
 0x92e   :  { %3001 = vmatmul.mubr.msk.f32.gmra.mxu1 %vm2206_vm5, %v2201_v38 }
 0x9dd   :  { %v2996_v52 = vpop.f32.mrf.mxu1 }
 0x9de   :  { %v2297_v7 = vadd.f32 %v2996_v52, %v2204_v5 }
 0x9df   :  { %v2291_v14 = vpop.f32.mrf.mxu1 }
 0x9e0   :  { %v2321_v8 = vadd.f32 %v2297_v7, %v4126_v46  ;;  %v2292_v42 = vadd.f32 %v2291_v14, %v2204_v5 }
 0x9e2   :  { %v2329_v2 = vsel %vm85_vm0, %v2321_v8, 0.0  ;;  %v2320_v41 = vadd.f32 %v2292_v42, %v4124_v13 }
 0x9e3   :  { %2330 = vadd.xlane.f32.xlu1 %v2329_v2 }
 0x9e8   :  { %v2999_v28 = vpop.f32.mrf.mxu1 }
 0x9e9   :  { %v2307_v6 = vadd.f32 %v2999_v28, %v2204_v5 }
 0x9ea   :  { %v2301_v43 = vpop.f32.mrf.mxu1 }
 0x9eb   :  { %v2323_v16 = vadd.f32 %v2307_v6, %v4138_v37  ;;  %v2302_v12 = vadd.f32 %v2301_v43, %v2204_v5 }
 0x9ed   :  { %v2335_v23 = vsel %vm85_vm0, %v2323_v16, 0.0  ;;  %v2322_v44 = vadd.f32 %v2302_v12, %v4133_v29 }
 0x9ee   :  { %v3002_v17 = vpop.f32.mrf.mxu1  ;;  %2336 = vadd.xlane.f32.xlu0 %v2335_v23 }
 0x9ef   :  { %v2317_v47 = vadd.f32 %v3002_v17, %v2204_v5  ;;  %v2332_v59 = vsel %vm85_vm0, %v2322_v44, 0.0 }
 0x9f0   :  { %v2311_v53 = vpop.f32.mrf.mxu1 }
 0x9f1   :  { %v2325_v50 = vadd.f32 %v2317_v47, %v4144_v0  ;;  %v2312_v21 = vadd.f32 %v2311_v53, %v2204_v5  ;;  %v2326_v0 = vsel %vm85_vm0, %v2320_v41, 0.0  ;;  %v2406_v47 = vsub.s32 6, %v3403_v60 }
 0x9f3   :  { %v2324_v46 = vadd.f32 %v2312_v21, %v4146_v10  ;;  %v2341_v51 = vsel %vm85_vm0, %v2325_v50, 0.0 }
 0x9f4   :  { %2342 = vadd.xlane.f32.xlu0 %v2341_v51 }
 0x9f5   :  { %v2338_v37 = vsel %vm85_vm0, %v2324_v46, 0.0 }
 0x9f8   :  { %2339 = vadd.xlane.f32.xlu0 %v2338_v37 }
 0x9fc   :  { %2333 = vadd.xlane.f32.xlu0 %v2332_v59 }
 0xa00   :  { %2327 = vadd.xlane.f32.xlu0 %v2326_v0 }
 0xa6c   :  { %v2331_v35 = vpop.xlane.xlu1 %2330 }
 0xa6d   :  { %v2345_v55 = vmul.f32 0.03125, %v2331_v35  ;;  %v2424_v35 = vld [vmem:[%s4224_s5] sm:$0xff] }
 0xa6f   :  { %v4186_v45 = vsub.f32 %v2321_v8, %v2345_v55 }
 0xa71   :  { %v2357_v18 = vmul.f32 %v4186_v45, %v4186_v45 }
 0xa73   :  { %v2365_v48 = vsel %vm85_vm0, %v2357_v18, 0.0 }
 0xa77   :  { %v2337_v22 = vpop.xlane.xlu0 %2336 }
 0xa78   :  { %v2347_v27 = vmul.f32 0.03125, %v2337_v22 }
 0xa7a   :  { %v4176_v10 = vsub.f32 %v2323_v16, %v2347_v27 }
 0xa7c   :  { %v2359_v26 = vmul.f32 %v4176_v10, %v4176_v10 }
 0xa7d   :  { %v2343_v39 = vpop.xlane.xlu0 %2342 }
 0xa7e   :  { %v2371_v29 = vsel %vm85_vm0, %v2359_v26, 0.0  ;;  %v2349_v62 = vmul.f32 0.03125, %v2343_v39 }
 0xa7f   :  { %2372 = vadd.xlane.f32.xlu0 %v2371_v29 }
 0xa80   :  { %v2355_v36 = vsub.f32 %v2325_v50, %v2349_v62  ;;  %v2416_v50 = vsub.s32 7, %v3403_v60 }
 0xa81   :  { %v2340_v30 = vpop.xlane.xlu0 %2339 }
 0xa82   :  { %v2348_v40 = vmul.f32 0.03125, %v2340_v30  ;;  %v2361_v56 = vmul.f32 %v2355_v36, %v2355_v36 }
 0xa84   :  { %v2354_v61 = vsub.f32 %v2324_v46, %v2348_v40  ;;  %v2377_v20 = vsel %vm85_vm0, %v2361_v56, 0.0  ;;  %v2407_v46 = vrot.slane %v4111_v3, %v2406_v47 }
 0xa85   :  { %v2334_v13 = vpop.xlane.xlu0 %2333 }
 0xa86   :  { %v2346_v1 = vmul.f32 0.03125, %v2334_v13  ;;  %v2360_v31 = vmul.f32 %v2354_v61, %v2354_v61 }
 0xa88   :  { %v4181_v58 = vsub.f32 %v2322_v44, %v2346_v1  ;;  %v2374_v33 = vsel %vm85_vm0, %v2360_v31, 0.0  ;;  %v2417_v44 = vrot.slane %v4111_v3, %v2416_v50 }
 0xa89   :  { %v2328_v54 = vpop.xlane.xlu0 %2327 }
 0xa8a   :  { %v2358_v32 = vmul.f32 %v4181_v58, %v4181_v58  ;;  %v2344_v63 = vmul.f32 0.03125, %v2328_v54 }
 0xa8c   :  { %v2368_v15 = vsel %vm85_vm0, %v2358_v32, 0.0  ;;  %v4189_v24 = vsub.f32 %v2320_v41, %v2344_v63 }
 0xa8d   :  { %2369 = vadd.xlane.f32.xlu0 %v2368_v15 }
 0xa8e   :  { %v2356_v57 = vmul.f32 %v4189_v24, %v4189_v24 }
 0xa90   :  { %v2362_v49 = vsel %vm85_vm0, %v2356_v57, 0.0 }
 0xa91   :  { %2378 = vadd.xlane.f32.xlu0 %v2377_v20 }
 0xa95   :  { %2375 = vadd.xlane.f32.xlu0 %v2374_v33 }
 0xa99   :  { %2366 = vadd.xlane.f32.xlu0 %v2365_v48 }
 0xa9d   :  { %2363 = vadd.xlane.f32.xlu0 %v2362_v49 }
 0xb08   :  { %v2373_v11 = vpop.xlane.xlu0 %2372 }
 0xb09   :  { %v2383_v9 = vmul.f32 0.03125, %v2373_v11 }
 0xb0b   :  { %v2389_v4 = vadd.f32 1e-05, %v2383_v9 }
 0xb0d   :  { %3173 = vrsqrt.f32 %v2389_v4 }
 0xb16   :  { %v2370_v34 = vpop.xlane.xlu0 %2369 }
 0xb17   :  { %v2382_v19 = vmul.f32 0.03125, %v2370_v34 }
 0xb19   :  { %v2388_v52 = vadd.f32 1e-05, %v2382_v19 }
 0xb1a   :  { %v2379_v38 = vpop.xlane.xlu0 %2378  ;;  %v3174_v53 = vpop.eup %3173 }
 0xb1b   :  { %v2385_v5 = vmul.f32 0.03125, %v2379_v38  ;;  %v2401_v37 = vmul.f32 %v3174_v53, %v4176_v10 }
 0xb1d   :  { %v2391_v7 = vadd.f32 1e-05, %v2385_v5  ;;  %v2411_v26 = vmul.f32 %v2407_v46, %v2401_v37 }
 0xb1e   :  { %v2376_v8 = vpop.xlane.xlu0 %2375 }
 0xb1f   :  { %3175 = vrsqrt.f32 %v2391_v7  ;;  %v2384_v2 = vmul.f32 0.03125, %v2376_v8  ;;  %v2421_v62 = vadd.f32 %v2417_v44, %v2411_v26 }
 0xb20   :  { %3177 = vrsqrt.f32 %v2388_v52 }
 0xb21   :  { %v2390_v14 = vadd.f32 1e-05, %v2384_v2 }
 0xb22   :  { %v2367_v28 = vpop.xlane.xlu0 %2366 }
 0xb23   :  { %3179 = vrsqrt.f32 %v2390_v14  ;;  %v2381_v6 = vmul.f32 0.03125, %v2367_v28 }
 0xb25   :  { %v2387_v43 = vadd.f32 1e-05, %v2381_v6 }
 0xb26   :  { %v2364_v16 = vpop.xlane.xlu0 %2363 }
 0xb27   :  { %3181 = vrsqrt.f32 %v2387_v43  ;;  %v2380_v23 = vmul.f32 0.03125, %v2364_v16 }
 0xb29   :  { %v2386_v17 = vadd.f32 1e-05, %v2380_v23 }
 0xb2b   :  { %3183 = vrsqrt.f32 %v2386_v17 }
 0xb2c   :  { %v3176_v21 = vpop.eup %3175 }
 0xb2d   :  { %v2403_v12 = vmul.f32 %v3176_v21, %v2355_v36  ;;  %v3178_v51 = vpop.eup %3177 }
 0xb2e   :  { %v2400_v22 = vmul.f32 %v3178_v51, %v4181_v58 }
 0xb2f   :  { %v2413_v42 = vmul.f32 %v2407_v46, %v2403_v12 }
 0xb30   :  { %v3180_v41 = vpop.eup %3179  ;;  %v2410_v29 = vmul.f32 %v2407_v46, %v2400_v22 }
 0xb31   :  { %v2423_v59 = vadd.f32 %v2417_v44, %v2413_v42  ;;  %v2402_v0 = vmul.f32 %v3180_v41, %v2354_v61 }
 0xb32   :  { %v2420_v10 = vadd.f32 %v2417_v44, %v2410_v29 }
 0xb33   :  { %3004 = vmatpush3.msra.mxu0 %v2423_v59  ;;  %v2412_v27 = vmul.f32 %v2407_v46, %v2402_v0 }
 0xb34   :  { %v3182_v39 = vpop.eup %3181  ;;  %3005 = vmatprep.subr.mxu0 %v3288_v25 }
 0xb35   :  { %v2422_v60 = vadd.f32 %v2417_v44, %v2412_v27  ;;  %v2399_v30 = vmul.f32 %v3182_v39, %v4186_v45 }
 0xb37   :  { %3006 = vmatpush3.msra.mxu0 %v2422_v60  ;;  %v2409_v3 = vmul.f32 %v2407_v46, %v2399_v30 }
 0xb38   :  { %v3184_v13 = vpop.eup %3183  ;;  %3007 = vmatprep.subr.mxu0 %v3288_v25 }
 0xb39   :  { %3008 = vmatpush3.msra.mxu0 %v2421_v62  ;;  %v2398_v1 = vmul.f32 %v3184_v13, %v4189_v24  ;;  %v2419_v36 = vadd.f32 %v2417_v44, %v2409_v3 }
 0xb3a   :  { %3009 = vmatprep.subr.mxu0 %v3288_v25 }
 0xb3b   :  { %3010 = vmatpush3.msra.mxu0 %v2420_v10  ;;  %v2408_v40 = vmul.f32 %v2407_v46, %v2398_v1 }
 0xb3c   :  { %3011 = vmatprep.subr.mxu0 %v3288_v25 }
 0xb3d   :  { %3012 = vmatpush3.msra.mxu0 %v2419_v36  ;;  %v2418_v58 = vadd.f32 %v2417_v44, %v2408_v40 }
 0xb3e   :  { %3013 = vmatprep.subr.mxu0 %v3288_v25 }
 0xb3f   :  { %3014 = vmatpush3.msra.mxu0 %v2418_v58 }
 0xb40   :  { %3016 = vmatmul.mubr.msk.f32.vlgmr.msra.gmra.mxu0 %vm452_vm2, %v2424_v35 }
 0xc00   :  { %v2494_v32 = vpop.f32.mrf.mxu0 }
 0xc01   :  { %v2498_v55 = vsel %vm85_vm0, %v2494_v32, 0.0 }
 0xc02   :  { %2499 = vst [vmem:[#allocation10] sm:$0xff] %v2498_v55  ;;  %v3017_v61 = vpop.f32.mrf.mxu0 }
 0xc03   :  { %3253 = shalt.err (!%p3250_p10)
}
 0xc04   :  { %2509 = dma.vmem_to_hbm [thread:$0]  %s2507_s14, 128, %s4227_s8, [#allocation9]  }
 0xc05   :  { %3266 = dma.done.wait [#allocation9], 128  }
 0xc06   :  { %3267 = vsyncadd [#allocation9], 4294967168 }
 0xc07   :  { %2513 = vsyncpa [#allocation8], 1 }
 0xc08   :  { %2514 = vsyncpa [#allocation9], 1 }

</bundles_post_ra>
